<compile_context>
chip_gen: v5e
topology: v5e:2x2
jax: 0.10.0
libtpu: 0.0.40
codegen_flags: <defaults>
</compile_context>

<pallas_src>
import jax
import jax.numpy as jnp
import numpy as np
from jax import lax
from jax.experimental import pallas as pl
from jax.experimental.pallas import tpu as pltpu

DEPTH = 32
RNN_HIDDEN_SIZE = 32
NUMBER_OF_LAYERS = 1   # TODO(synk): multi-layer stacking unnecessary; only layer -1's c_n is returned and NUMBER_OF_LAYERS == 1
BIDIRECTIONAL = True


# ---------------------------------------------------------------------------
# Kernel
# ---------------------------------------------------------------------------
def encoder_kernel(xf_ref, xr_ref, wp_ref, wihf_ref, wihr_ref, bg_ref, whh_ref,
                   out_ref):
    """Fused bidirectional LSTM encoder.

    xf_ref  : (T*B, D)  time-major input, flattened, forward time order
    xr_ref  : (T*B, D)  same rows in reversed time order (backward direction)
    wp_ref  : (D, E)    reprojection weight (pre-transposed)
    wihf/r  : (E, 8H)   input->gate weights scattered into the fused gate
                        column layout [i_f,i_r,f_f,f_r,o_f,o_r,g_f,g_r]
    bg_ref  : (1, 8H)   all biases folded (b_ih + b_hh + bp @ wih), same layout
    whh_ref : (2H, 8H)  block-diagonal recurrent weight for h = [h_f | h_r]
    out_ref : (B, 2H)   cat([c_fwd, c_bwd], axis=1)
    """
    B, H2 = out_ref.shape
    H = H2 // 2
    TB, _ = xf_ref.shape
    T = TB // B

    wp = wp_ref[...]
    whh = whh_ref[...]

    # ---- hoisted input-side matmuls (off the serial dependency chain) ----
    xpf = jnp.dot(xf_ref[...], wp, preferred_element_type=jnp.float32)   # (T*B, E)
    xpr = jnp.dot(xr_ref[...], wp, preferred_element_type=jnp.float32)   # (T*B, E)
    gx = (jnp.dot(xpf, wihf_ref[...], preferred_element_type=jnp.float32)
          + jnp.dot(xpr, wihr_ref[...], preferred_element_type=jnp.float32)
          + bg_ref[...])                                                  # (T*B, 8H)

    # ---- fused fwd+bwd recurrence, fully unrolled (T static) ----
    h = jnp.zeros((B, H2), jnp.float32)   # [h_f | h_r]
    c = jnp.zeros((B, H2), jnp.float32)   # [c_f | c_r]
    for t in range(T):
        gates = gx[t * B:(t + 1) * B, :] + jnp.dot(
            h, whh, preferred_element_type=jnp.float32)                   # (B, 8H)
        s = jax.nn.sigmoid(gates[:, :6 * H])   # i, f, o for both directions
        g = jnp.tanh(gates[:, 6 * H:])         # g for both directions
        i = s[:, 0:2 * H]
        f = s[:, 2 * H:4 * H]
        o = s[:, 4 * H:6 * H]
        c = f * c + i * g
        h = o * jnp.tanh(c)

    out_ref[...] = c   # single 2H-wide store == cat([c_fwd, c_bwd], dim=1)


# ---------------------------------------------------------------------------
# Weight packing (wrapper-side, pure re-layout / constant folding of weights)
# ---------------------------------------------------------------------------
def _scatter_gate_cols(w4, direction):
    """Permute PyTorch gate order [i, f, g, o] and scatter the 4H columns into
    the fused 8H layout [i_f, i_r, f_f, f_r, o_f, o_r, g_f, g_r]."""
    i_, f_, g_, o_ = jnp.split(w4, 4, axis=-1)
    z = jnp.zeros_like(i_)
    if direction == 0:   # forward
        blocks = [i_, z, f_, z, o_, z, g_, z]
    else:                # backward
        blocks = [z, i_, z, f_, z, o_, z, g_]
    return jnp.concatenate(blocks, axis=-1)


def pack_params(params):
    wihf = _scatter_gate_cols(params["wih_f_t"], 0)                       # (E, 8H)
    wihr = _scatter_gate_cols(params["wih_r_t"], 1)                       # (E, 8H)
    whh = jnp.concatenate([_scatter_gate_cols(params["whh_f_t"], 0),
                           _scatter_gate_cols(params["whh_r_t"], 1)],
                          axis=0)                                         # (2H, 8H)
    # Fold LSTM biases and the reprojection bias (bp @ wih) into one row.
    bg = (_scatter_gate_cols(params["b_f"], 0)
          + _scatter_gate_cols(params["b_r"], 1)
          + params["bp"] @ wihf + params["bp"] @ wihr)                    # (1, 8H)
    return dict(wp=params["wp_t"], wihf=wihf, wihr=wihr, bg=bg, whh=whh)


# ---------------------------------------------------------------------------
# Wrapper
# ---------------------------------------------------------------------------
def encoder_forward(x_btd, params):
    B, T, D = x_btd.shape
    H = RNN_HIDDEN_SIZE
    E = params["wp_t"].shape[1]
    packed = pack_params(params)

    # batch-first -> time-major; pure layout plumbing (no compute hoisted).
    x_tbd = jnp.transpose(x_btd, (1, 0, 2)).astype(jnp.float32)
    xf = x_tbd.reshape(T * B, D)
    xr = x_tbd[::-1].reshape(T * B, D)

    flops = (4 * T * B * D * E              # two reprojection matmuls
             + 4 * T * B * E * 8 * H        # two input->gate matmuls
             + 2 * T * B * 2 * H * 8 * H)   # fused recurrent matmuls
    transcendentals = T * B * 10 * H
    bytes_accessed = 4 * (2 * T * B * D + D * E + 2 * E * 8 * H
                          + 8 * H + 2 * H * 8 * H + B * 2 * H)

    vmem = pl.BlockSpec(memory_space=pltpu.MemorySpace.VMEM)
    return pl.pallas_call(
        encoder_kernel,
        out_shape=jax.ShapeDtypeStruct((B, 2 * H), jnp.float32),
        in_specs=[vmem] * 7,
        out_specs=vmem,
        cost_estimate=pl.CostEstimate(flops=flops,
                                      transcendentals=transcendentals,
                                      bytes_accessed=bytes_accessed),
    )(xf, xr, packed["wp"], packed["wihf"], packed["wihr"],
      packed["bg"], packed["whh"])


# ---------------------------------------------------------------------------
# Pure-JAX reference replicating PyTorch semantics
# ---------------------------------------------------------------------------
def encoder_reference(x_btd, params):
    H = RNN_HIDDEN_SIZE
    xp = x_btd @ params["wp_t"] + params["bp"]

    def run_dir(x_seq, wih_t, whh_t, b):
        B = x_seq.shape[0]

        def step(carry, x_t):
            h, c = carry
            gates = x_t @ wih_t + h @ whh_t + b
            i = jax.nn.sigmoid(gates[:, :H])
            f = jax.nn.sigmoid(gates[:, H:2 * H])
            g = jnp.tanh(gates[:, 2 * H:3 * H])
            o = jax.nn.sigmoid(gates[:, 3 * H:])
            c = f * c + i * g
            h = o * jnp.tanh(c)
            return (h, c), None

        init = (jnp.zeros((B, H), jnp.float32), jnp.zeros((B, H), jnp.float32))
        (_, c), _ = lax.scan(step, init, jnp.transpose(x_seq, (1, 0, 2)))
        return c

    c_f = run_dir(xp, params["wih_f_t"], params["whh_f_t"], params["b_f"])
    c_r = run_dir(xp[:, ::-1, :], params["wih_r_t"], params["whh_r_t"], params["b_r"])
    return jnp.concatenate([c_f, c_r], axis=1)


def make_params(key):
    D, E, H = DEPTH, DEPTH, RNN_HIDDEN_SIZE
    ks = jax.random.split(key, 12)
    xav = float(np.sqrt(6.0 / (D + E)))          # xavier_uniform_ for reprojection
    lstm_lim = float(1.0 / np.sqrt(H))           # PyTorch LSTM default init
    u = lambda k, shape, lim: jax.random.uniform(k, shape, jnp.float32, -lim, lim)
    return dict(
        wp_t=u(ks[0], (D, E), xav),
        bp=u(ks[1], (1, E), lstm_lim),
        wih_f_t=u(ks[2], (E, 4 * H), lstm_lim),
        whh_f_t=u(ks[3], (H, 4 * H), lstm_lim),
        b_f=u(ks[4], (1, 4 * H), lstm_lim) + u(ks[5], (1, 4 * H), lstm_lim),
        wih_r_t=u(ks[6], (E, 4 * H), lstm_lim),
        whh_r_t=u(ks[7], (H, 4 * H), lstm_lim),
        b_r=u(ks[8], (1, 4 * H), lstm_lim) + u(ks[9], (1, 4 * H), lstm_lim),
    )


if __name__ == "__main__":
    key = jax.random.PRNGKey(0)
    pkey, xkey = jax.random.split(key)
    params = make_params(pkey)

    B, T = 8, 8
    x = jax.random.normal(xkey, (B, T, DEPTH), jnp.float32)   # batch-first, like PyTorch

    out = jax.block_until_ready(encoder_forward(x, params))
    ref = jax.block_until_ready(encoder_reference(x, params))

    assert out.shape == (B, 2 * RNN_HIDDEN_SIZE), out.shape
    np.testing.assert_allclose(np.asarray(out), np.asarray(ref), rtol=2e-5, atol=2e-5)
    print("KERNEL_OK")
</pallas_src>

<mosaic_0001>
module attributes {stable_mosaic.version = 11 : i64} {
  func.func @encoder_kernel(%arg0: memref<64x32xf32, #tpu.memory_space<vmem>>, %arg1: memref<64x32xf32, #tpu.memory_space<vmem>>, %arg2: memref<32x32xf32, #tpu.memory_space<vmem>>, %arg3: memref<32x256xf32, #tpu.memory_space<vmem>>, %arg4: memref<32x256xf32, #tpu.memory_space<vmem>>, %arg5: memref<1x256xf32, #tpu.memory_space<vmem>>, %arg6: memref<64x256xf32, #tpu.memory_space<vmem>>, %arg7: memref<8x64xf32, #tpu.memory_space<vmem>>) attributes {dimension_semantics = [], scalar_prefetch = 0 : i64, scratch_operands = 0 : i64, tpu.core_type = #tpu.core_type<tc>} {
    %c0 = arith.constant 0 : index
    %c0_0 = arith.constant 0 : index
    %0 = vector.load %arg2[%c0, %c0_0] : memref<32x32xf32, #tpu.memory_space<vmem>>, vector<32x32xf32>
    %c0_1 = arith.constant 0 : index
    %c0_2 = arith.constant 0 : index
    %1 = vector.load %arg6[%c0_1, %c0_2] : memref<64x256xf32, #tpu.memory_space<vmem>>, vector<64x256xf32>
    %c0_3 = arith.constant 0 : index
    %c0_4 = arith.constant 0 : index
    %2 = vector.load %arg0[%c0_3, %c0_4] : memref<64x32xf32, #tpu.memory_space<vmem>>, vector<64x32xf32>
    %cst = arith.constant dense<0.000000e+00> : vector<64x32xf32>
    %3 = tpu.matmul %2, %0, %cst {dimension_numbers = #tpu.dot_dimension_numbers<[1], [0], [0], [1], [0, 0, 1, 1], [], []>} : vector<64x32xf32>, vector<32x32xf32>, vector<64x32xf32> -> vector<64x32xf32>
    %c0_5 = arith.constant 0 : index
    %c0_6 = arith.constant 0 : index
    %4 = vector.load %arg1[%c0_5, %c0_6] : memref<64x32xf32, #tpu.memory_space<vmem>>, vector<64x32xf32>
    %cst_7 = arith.constant dense<0.000000e+00> : vector<64x32xf32>
    %5 = tpu.matmul %4, %0, %cst_7 {dimension_numbers = #tpu.dot_dimension_numbers<[1], [0], [0], [1], [0, 0, 1, 1], [], []>} : vector<64x32xf32>, vector<32x32xf32>, vector<64x32xf32> -> vector<64x32xf32>
    %c0_8 = arith.constant 0 : index
    %c0_9 = arith.constant 0 : index
    %6 = vector.load %arg3[%c0_8, %c0_9] : memref<32x256xf32, #tpu.memory_space<vmem>>, vector<32x256xf32>
    %cst_10 = arith.constant dense<0.000000e+00> : vector<64x256xf32>
    %7 = tpu.matmul %3, %6, %cst_10 {dimension_numbers = #tpu.dot_dimension_numbers<[1], [0], [0], [1], [0, 0, 1, 1], [], []>} : vector<64x32xf32>, vector<32x256xf32>, vector<64x256xf32> -> vector<64x256xf32>
    %c0_11 = arith.constant 0 : index
    %c0_12 = arith.constant 0 : index
    %8 = vector.load %arg4[%c0_11, %c0_12] : memref<32x256xf32, #tpu.memory_space<vmem>>, vector<32x256xf32>
    %cst_13 = arith.constant dense<0.000000e+00> : vector<64x256xf32>
    %9 = tpu.matmul %5, %8, %cst_13 {dimension_numbers = #tpu.dot_dimension_numbers<[1], [0], [0], [1], [0, 0, 1, 1], [], []>} : vector<64x32xf32>, vector<32x256xf32>, vector<64x256xf32> -> vector<64x256xf32>
    %10 = arith.addf %7, %9 : vector<64x256xf32>
    %c0_14 = arith.constant 0 : index
    %c0_15 = arith.constant 0 : index
    %11 = vector.load %arg5[%c0_14, %c0_15] : memref<1x256xf32, #tpu.memory_space<vmem>>, vector<1x256xf32>
    %12 = vector.broadcast %11 : vector<1x256xf32> to vector<64x256xf32>
    %13 = arith.addf %10, %12 : vector<64x256xf32>
    %cst_16 = arith.constant 0.000000e+00 : f32
    %14 = vector.broadcast %cst_16 : f32 to vector<8x64xf32>
    %cst_17 = arith.constant 0.000000e+00 : f32
    %15 = vector.broadcast %cst_17 : f32 to vector<8x64xf32>
    %16 = vector.extract_strided_slice %13 {offsets = [0, 0], sizes = [8, 256], strides = [1, 1]} : vector<64x256xf32> to vector<8x256xf32>
    %cst_18 = arith.constant dense<0.000000e+00> : vector<8x256xf32>
    %17 = tpu.matmul %14, %1, %cst_18 {dimension_numbers = #tpu.dot_dimension_numbers<[1], [0], [0], [1], [0, 0, 1, 1], [], []>} : vector<8x64xf32>, vector<64x256xf32>, vector<8x256xf32> -> vector<8x256xf32>
    %18 = arith.addf %16, %17 : vector<8x256xf32>
    %19 = vector.extract_strided_slice %18 {offsets = [0, 0], sizes = [8, 192], strides = [1, 1]} : vector<8x256xf32> to vector<8x192xf32>
    %20 = arith.negf %19 : vector<8x192xf32>
    %21 = math.exp %20 : vector<8x192xf32>
    %cst_19 = arith.constant 1.000000e+00 : f32
    %22 = vector.broadcast %cst_19 : f32 to vector<8x192xf32>
    %23 = arith.addf %22, %21 : vector<8x192xf32>
    %24 = arith.divf %22, %23 : vector<8x192xf32>
    %25 = vector.extract_strided_slice %18 {offsets = [0, 192], sizes = [8, 64], strides = [1, 1]} : vector<8x256xf32> to vector<8x64xf32>
    %26 = math.tanh %25 : vector<8x64xf32>
    %27 = vector.extract_strided_slice %24 {offsets = [0, 0], sizes = [8, 64], strides = [1, 1]} : vector<8x192xf32> to vector<8x64xf32>
    %28 = vector.extract_strided_slice %24 {offsets = [0, 64], sizes = [8, 64], strides = [1, 1]} : vector<8x192xf32> to vector<8x64xf32>
    %29 = vector.extract_strided_slice %24 {offsets = [0, 128], sizes = [8, 64], strides = [1, 1]} : vector<8x192xf32> to vector<8x64xf32>
    %30 = arith.mulf %28, %15 : vector<8x64xf32>
    %31 = arith.mulf %27, %26 : vector<8x64xf32>
    %32 = arith.addf %30, %31 : vector<8x64xf32>
    %33 = math.tanh %32 : vector<8x64xf32>
    %34 = arith.mulf %29, %33 : vector<8x64xf32>
    %35 = vector.extract_strided_slice %13 {offsets = [8, 0], sizes = [8, 256], strides = [1, 1]} : vector<64x256xf32> to vector<8x256xf32>
    %cst_20 = arith.constant dense<0.000000e+00> : vector<8x256xf32>
    %36 = tpu.matmul %34, %1, %cst_20 {dimension_numbers = #tpu.dot_dimension_numbers<[1], [0], [0], [1], [0, 0, 1, 1], [], []>} : vector<8x64xf32>, vector<64x256xf32>, vector<8x256xf32> -> vector<8x256xf32>
    %37 = arith.addf %35, %36 : vector<8x256xf32>
    %38 = vector.extract_strided_slice %37 {offsets = [0, 0], sizes = [8, 192], strides = [1, 1]} : vector<8x256xf32> to vector<8x192xf32>
    %39 = arith.negf %38 : vector<8x192xf32>
    %40 = math.exp %39 : vector<8x192xf32>
    %cst_21 = arith.constant 1.000000e+00 : f32
    %41 = vector.broadcast %cst_21 : f32 to vector<8x192xf32>
    %42 = arith.addf %41, %40 : vector<8x192xf32>
    %43 = arith.divf %41, %42 : vector<8x192xf32>
    %44 = vector.extract_strided_slice %37 {offsets = [0, 192], sizes = [8, 64], strides = [1, 1]} : vector<8x256xf32> to vector<8x64xf32>
    %45 = math.tanh %44 : vector<8x64xf32>
    %46 = vector.extract_strided_slice %43 {offsets = [0, 0], sizes = [8, 64], strides = [1, 1]} : vector<8x192xf32> to vector<8x64xf32>
    %47 = vector.extract_strided_slice %43 {offsets = [0, 64], sizes = [8, 64], strides = [1, 1]} : vector<8x192xf32> to vector<8x64xf32>
    %48 = vector.extract_strided_slice %43 {offsets = [0, 128], sizes = [8, 64], strides = [1, 1]} : vector<8x192xf32> to vector<8x64xf32>
    %49 = arith.mulf %47, %32 : vector<8x64xf32>
    %50 = arith.mulf %46, %45 : vector<8x64xf32>
    %51 = arith.addf %49, %50 : vector<8x64xf32>
    %52 = math.tanh %51 : vector<8x64xf32>
    %53 = arith.mulf %48, %52 : vector<8x64xf32>
    %54 = vector.extract_strided_slice %13 {offsets = [16, 0], sizes = [8, 256], strides = [1, 1]} : vector<64x256xf32> to vector<8x256xf32>
    %cst_22 = arith.constant dense<0.000000e+00> : vector<8x256xf32>
    %55 = tpu.matmul %53, %1, %cst_22 {dimension_numbers = #tpu.dot_dimension_numbers<[1], [0], [0], [1], [0, 0, 1, 1], [], []>} : vector<8x64xf32>, vector<64x256xf32>, vector<8x256xf32> -> vector<8x256xf32>
    %56 = arith.addf %54, %55 : vector<8x256xf32>
    %57 = vector.extract_strided_slice %56 {offsets = [0, 0], sizes = [8, 192], strides = [1, 1]} : vector<8x256xf32> to vector<8x192xf32>
    %58 = arith.negf %57 : vector<8x192xf32>
    %59 = math.exp %58 : vector<8x192xf32>
    %cst_23 = arith.constant 1.000000e+00 : f32
    %60 = vector.broadcast %cst_23 : f32 to vector<8x192xf32>
    %61 = arith.addf %60, %59 : vector<8x192xf32>
    %62 = arith.divf %60, %61 : vector<8x192xf32>
    %63 = vector.extract_strided_slice %56 {offsets = [0, 192], sizes = [8, 64], strides = [1, 1]} : vector<8x256xf32> to vector<8x64xf32>
    %64 = math.tanh %63 : vector<8x64xf32>
    %65 = vector.extract_strided_slice %62 {offsets = [0, 0], sizes = [8, 64], strides = [1, 1]} : vector<8x192xf32> to vector<8x64xf32>
    %66 = vector.extract_strided_slice %62 {offsets = [0, 64], sizes = [8, 64], strides = [1, 1]} : vector<8x192xf32> to vector<8x64xf32>
    %67 = vector.extract_strided_slice %62 {offsets = [0, 128], sizes = [8, 64], strides = [1, 1]} : vector<8x192xf32> to vector<8x64xf32>
    %68 = arith.mulf %66, %51 : vector<8x64xf32>
    %69 = arith.mulf %65, %64 : vector<8x64xf32>
    %70 = arith.addf %68, %69 : vector<8x64xf32>
    %71 = math.tanh %70 : vector<8x64xf32>
    %72 = arith.mulf %67, %71 : vector<8x64xf32>
    %73 = vector.extract_strided_slice %13 {offsets = [24, 0], sizes = [8, 256], strides = [1, 1]} : vector<64x256xf32> to vector<8x256xf32>
    %cst_24 = arith.constant dense<0.000000e+00> : vector<8x256xf32>
    %74 = tpu.matmul %72, %1, %cst_24 {dimension_numbers = #tpu.dot_dimension_numbers<[1], [0], [0], [1], [0, 0, 1, 1], [], []>} : vector<8x64xf32>, vector<64x256xf32>, vector<8x256xf32> -> vector<8x256xf32>
    %75 = arith.addf %73, %74 : vector<8x256xf32>
    %76 = vector.extract_strided_slice %75 {offsets = [0, 0], sizes = [8, 192], strides = [1, 1]} : vector<8x256xf32> to vector<8x192xf32>
    %77 = arith.negf %76 : vector<8x192xf32>
    %78 = math.exp %77 : vector<8x192xf32>
    %cst_25 = arith.constant 1.000000e+00 : f32
    %79 = vector.broadcast %cst_25 : f32 to vector<8x192xf32>
    %80 = arith.addf %79, %78 : vector<8x192xf32>
    %81 = arith.divf %79, %80 : vector<8x192xf32>
    %82 = vector.extract_strided_slice %75 {offsets = [0, 192], sizes = [8, 64], strides = [1, 1]} : vector<8x256xf32> to vector<8x64xf32>
    %83 = math.tanh %82 : vector<8x64xf32>
    %84 = vector.extract_strided_slice %81 {offsets = [0, 0], sizes = [8, 64], strides = [1, 1]} : vector<8x192xf32> to vector<8x64xf32>
    %85 = vector.extract_strided_slice %81 {offsets = [0, 64], sizes = [8, 64], strides = [1, 1]} : vector<8x192xf32> to vector<8x64xf32>
    %86 = vector.extract_strided_slice %81 {offsets = [0, 128], sizes = [8, 64], strides = [1, 1]} : vector<8x192xf32> to vector<8x64xf32>
    %87 = arith.mulf %85, %70 : vector<8x64xf32>
    %88 = arith.mulf %84, %83 : vector<8x64xf32>
    %89 = arith.addf %87, %88 : vector<8x64xf32>
    %90 = math.tanh %89 : vector<8x64xf32>
    %91 = arith.mulf %86, %90 : vector<8x64xf32>
    %92 = vector.extract_strided_slice %13 {offsets = [32, 0], sizes = [8, 256], strides = [1, 1]} : vector<64x256xf32> to vector<8x256xf32>
    %cst_26 = arith.constant dense<0.000000e+00> : vector<8x256xf32>
    %93 = tpu.matmul %91, %1, %cst_26 {dimension_numbers = #tpu.dot_dimension_numbers<[1], [0], [0], [1], [0, 0, 1, 1], [], []>} : vector<8x64xf32>, vector<64x256xf32>, vector<8x256xf32> -> vector<8x256xf32>
    %94 = arith.addf %92, %93 : vector<8x256xf32>
    %95 = vector.extract_strided_slice %94 {offsets = [0, 0], sizes = [8, 192], strides = [1, 1]} : vector<8x256xf32> to vector<8x192xf32>
    %96 = arith.negf %95 : vector<8x192xf32>
    %97 = math.exp %96 : vector<8x192xf32>
    %cst_27 = arith.constant 1.000000e+00 : f32
    %98 = vector.broadcast %cst_27 : f32 to vector<8x192xf32>
    %99 = arith.addf %98, %97 : vector<8x192xf32>
    %100 = arith.divf %98, %99 : vector<8x192xf32>
    %101 = vector.extract_strided_slice %94 {offsets = [0, 192], sizes = [8, 64], strides = [1, 1]} : vector<8x256xf32> to vector<8x64xf32>
    %102 = math.tanh %101 : vector<8x64xf32>
    %103 = vector.extract_strided_slice %100 {offsets = [0, 0], sizes = [8, 64], strides = [1, 1]} : vector<8x192xf32> to vector<8x64xf32>
    %104 = vector.extract_strided_slice %100 {offsets = [0, 64], sizes = [8, 64], strides = [1, 1]} : vector<8x192xf32> to vector<8x64xf32>
    %105 = vector.extract_strided_slice %100 {offsets = [0, 128], sizes = [8, 64], strides = [1, 1]} : vector<8x192xf32> to vector<8x64xf32>
    %106 = arith.mulf %104, %89 : vector<8x64xf32>
    %107 = arith.mulf %103, %102 : vector<8x64xf32>
    %108 = arith.addf %106, %107 : vector<8x64xf32>
    %109 = math.tanh %108 : vector<8x64xf32>
    %110 = arith.mulf %105, %109 : vector<8x64xf32>
    %111 = vector.extract_strided_slice %13 {offsets = [40, 0], sizes = [8, 256], strides = [1, 1]} : vector<64x256xf32> to vector<8x256xf32>
    %cst_28 = arith.constant dense<0.000000e+00> : vector<8x256xf32>
    %112 = tpu.matmul %110, %1, %cst_28 {dimension_numbers = #tpu.dot_dimension_numbers<[1], [0], [0], [1], [0, 0, 1, 1], [], []>} : vector<8x64xf32>, vector<64x256xf32>, vector<8x256xf32> -> vector<8x256xf32>
    %113 = arith.addf %111, %112 : vector<8x256xf32>
    %114 = vector.extract_strided_slice %113 {offsets = [0, 0], sizes = [8, 192], strides = [1, 1]} : vector<8x256xf32> to vector<8x192xf32>
    %115 = arith.negf %114 : vector<8x192xf32>
    %116 = math.exp %115 : vector<8x192xf32>
    %cst_29 = arith.constant 1.000000e+00 : f32
    %117 = vector.broadcast %cst_29 : f32 to vector<8x192xf32>
    %118 = arith.addf %117, %116 : vector<8x192xf32>
    %119 = arith.divf %117, %118 : vector<8x192xf32>
    %120 = vector.extract_strided_slice %113 {offsets = [0, 192], sizes = [8, 64], strides = [1, 1]} : vector<8x256xf32> to vector<8x64xf32>
    %121 = math.tanh %120 : vector<8x64xf32>
    %122 = vector.extract_strided_slice %119 {offsets = [0, 0], sizes = [8, 64], strides = [1, 1]} : vector<8x192xf32> to vector<8x64xf32>
    %123 = vector.extract_strided_slice %119 {offsets = [0, 64], sizes = [8, 64], strides = [1, 1]} : vector<8x192xf32> to vector<8x64xf32>
    %124 = vector.extract_strided_slice %119 {offsets = [0, 128], sizes = [8, 64], strides = [1, 1]} : vector<8x192xf32> to vector<8x64xf32>
    %125 = arith.mulf %123, %108 : vector<8x64xf32>
    %126 = arith.mulf %122, %121 : vector<8x64xf32>
    %127 = arith.addf %125, %126 : vector<8x64xf32>
    %128 = math.tanh %127 : vector<8x64xf32>
    %129 = arith.mulf %124, %128 : vector<8x64xf32>
    %130 = vector.extract_strided_slice %13 {offsets = [48, 0], sizes = [8, 256], strides = [1, 1]} : vector<64x256xf32> to vector<8x256xf32>
    %cst_30 = arith.constant dense<0.000000e+00> : vector<8x256xf32>
    %131 = tpu.matmul %129, %1, %cst_30 {dimension_numbers = #tpu.dot_dimension_numbers<[1], [0], [0], [1], [0, 0, 1, 1], [], []>} : vector<8x64xf32>, vector<64x256xf32>, vector<8x256xf32> -> vector<8x256xf32>
    %132 = arith.addf %130, %131 : vector<8x256xf32>
    %133 = vector.extract_strided_slice %132 {offsets = [0, 0], sizes = [8, 192], strides = [1, 1]} : vector<8x256xf32> to vector<8x192xf32>
    %134 = arith.negf %133 : vector<8x192xf32>
    %135 = math.exp %134 : vector<8x192xf32>
    %cst_31 = arith.constant 1.000000e+00 : f32
    %136 = vector.broadcast %cst_31 : f32 to vector<8x192xf32>
    %137 = arith.addf %136, %135 : vector<8x192xf32>
    %138 = arith.divf %136, %137 : vector<8x192xf32>
    %139 = vector.extract_strided_slice %132 {offsets = [0, 192], sizes = [8, 64], strides = [1, 1]} : vector<8x256xf32> to vector<8x64xf32>
    %140 = math.tanh %139 : vector<8x64xf32>
    %141 = vector.extract_strided_slice %138 {offsets = [0, 0], sizes = [8, 64], strides = [1, 1]} : vector<8x192xf32> to vector<8x64xf32>
    %142 = vector.extract_strided_slice %138 {offsets = [0, 64], sizes = [8, 64], strides = [1, 1]} : vector<8x192xf32> to vector<8x64xf32>
    %143 = vector.extract_strided_slice %138 {offsets = [0, 128], sizes = [8, 64], strides = [1, 1]} : vector<8x192xf32> to vector<8x64xf32>
    %144 = arith.mulf %142, %127 : vector<8x64xf32>
    %145 = arith.mulf %141, %140 : vector<8x64xf32>
    %146 = arith.addf %144, %145 : vector<8x64xf32>
    %147 = math.tanh %146 : vector<8x64xf32>
    %148 = arith.mulf %143, %147 : vector<8x64xf32>
    %149 = vector.extract_strided_slice %13 {offsets = [56, 0], sizes = [8, 256], strides = [1, 1]} : vector<64x256xf32> to vector<8x256xf32>
    %cst_32 = arith.constant dense<0.000000e+00> : vector<8x256xf32>
    %150 = tpu.matmul %148, %1, %cst_32 {dimension_numbers = #tpu.dot_dimension_numbers<[1], [0], [0], [1], [0, 0, 1, 1], [], []>} : vector<8x64xf32>, vector<64x256xf32>, vector<8x256xf32> -> vector<8x256xf32>
    %151 = arith.addf %149, %150 : vector<8x256xf32>
    %152 = vector.extract_strided_slice %151 {offsets = [0, 0], sizes = [8, 192], strides = [1, 1]} : vector<8x256xf32> to vector<8x192xf32>
    %153 = arith.negf %152 : vector<8x192xf32>
    %154 = math.exp %153 : vector<8x192xf32>
    %cst_33 = arith.constant 1.000000e+00 : f32
    %155 = vector.broadcast %cst_33 : f32 to vector<8x192xf32>
    %156 = arith.addf %155, %154 : vector<8x192xf32>
    %157 = arith.divf %155, %156 : vector<8x192xf32>
    %158 = vector.extract_strided_slice %151 {offsets = [0, 192], sizes = [8, 64], strides = [1, 1]} : vector<8x256xf32> to vector<8x64xf32>
    %159 = math.tanh %158 : vector<8x64xf32>
    %160 = vector.extract_strided_slice %157 {offsets = [0, 0], sizes = [8, 64], strides = [1, 1]} : vector<8x192xf32> to vector<8x64xf32>
    %161 = vector.extract_strided_slice %157 {offsets = [0, 64], sizes = [8, 64], strides = [1, 1]} : vector<8x192xf32> to vector<8x64xf32>
    %162 = arith.mulf %161, %146 : vector<8x64xf32>
    %163 = arith.mulf %160, %159 : vector<8x64xf32>
    %164 = arith.addf %162, %163 : vector<8x64xf32>
    %c0_34 = arith.constant 0 : index
    %c0_35 = arith.constant 0 : index
    %165 = vector.load %arg7[%c0_34, %c0_35] : memref<8x64xf32, #tpu.memory_space<vmem>>, vector<8x64xf32>
    tpu.vector_store %arg7[%c0_34, %c0_35], %164 {strides = array<i32>} : memref<8x64xf32, #tpu.memory_space<vmem>>, vector<8x64xf32>,
    return
  }
}

</mosaic_0001>

<bundles_post_ra>
// kernel: tpu_custom_call.1
= control target key start
LH: loop header
LB: loop body
LE: loop exit
PB: predicated region body
PF: predicated region fallthrough
CT: control target
= control target key end

     0   :  { %12 = vsyncpa [#allocation3], 0  ;;  %s2025_s0 = inlined_call_operand.vmem [shape: f32[64,32], index: 0, kind: input, shape index: {}]   ;;  %s2026_s1 = inlined_call_operand.vmem [shape: f32[64,32], index: 1, kind: input, shape index: {}]   ;;  %s2027_s2 = inlined_call_operand.hbm [shape: f32[32,32], index: 2, kind: input, shape index: {}]   ;;  %s2028_s3 = inlined_call_operand.vmem [shape: f32[32,256], index: 3, kind: input, shape index: {}]   ;;  %s2029_s4 = inlined_call_operand.hbm [shape: f32[32,256], index: 4, kind: input, shape index: {}]   ;;  %s2030_s5 = inlined_call_operand.vmem [shape: f32[1,256], index: 5, kind: input, shape index: {}]   ;;  %s2031_s6 = inlined_call_operand.vmem [shape: f32[64,256], index: 6, kind: input, shape index: {}]   ;;  %s2032_s7 = inlined_call_operand.hbm [shape: f32[8,64], index: 7, kind: output, shape index: {}]  }
   0x1   :  { %13 = vsyncpa [#allocation6], 0 }
   0x2   :  { %14 = vsyncpa [#allocation4], 0  ;;  %s23_s26 = sshll.u32 %s2027_s2, 4  ;;  %s1537_s27 = smov [#allocation2]   ;;  %s24_s26 = int_to_ptr.hbm [resolvable:$true] %s23_s26 }
   0x3   :  { %s25_s28 = sshll.u32 %s1537_s27, 4  ;;  %s38_s8 = sshll.u32 %s2029_s4, 4  ;;  %s26_s28 = int_to_ptr.vmem [resolvable:$true] %s25_s28  ;;  %s39_s8 = int_to_ptr.hbm [resolvable:$true] %s38_s8 }
   0x4   :  { %s1538_s9 = smov 128   ;;  %s1539_s10 = smov 8  }
   0x5   :  { %31 = dma.hbm_to_vmem [thread:$0]  %s24_s26, 512, %s26_s28, [#allocation3], %s1538_s9, %s1538_s9, %s1539_s10  }
   0x6   :  { %s1540_s11 = smov [#allocation5]   ;;  %s1541_s13 = smov 256  }
   0x7   :  { %s40_s12 = sshll.u32 %s1540_s11, 4  ;;  %s1542_s14 = smov 16   ;;  %s41_s12 = int_to_ptr.vmem [resolvable:$true] %s40_s12 }
   0x8   :  { %46 = dma.hbm_to_vmem [thread:$0]  %s39_s8, 1024, %s41_s12, [#allocation6], %s1541_s13, %s1541_s13, %s1542_s14  }
   0x9   :  { %1531 = dma.done.wait [#allocation3], 512  }
   0xa   :  { %1532 = vsyncadd [#allocation3], 4294966784 }
   0xb   :  { %1533 = dma.done.wait [#allocation6], 1024  }
   0xc   :  { %1534 = vsyncadd [#allocation6], 4294966272  ;;  %v62_v0 = vld [vmem:[#allocation2 + $0x18] sm:$0xff]  ;;  %v61_v1 = vld [vmem:[#allocation2 + $0x10] sm:$0xff]  ;;  %vm87_vm0 = vcmask 261120   ;;  %vm476_vm9 = vcmask 523264  }
   0xd   :  { %197 = vmatpush.msra.mxu1 %v62_v0  ;;  %124 = vmatpush.msra.mxu0 %v62_v0  ;;  %v60_v2 = vld [vmem:[#allocation2 + $0x8] sm:$0xff]  ;;  %v59_v3 = vld [vmem:[#allocation2] sm:$0xff]  ;;  %v155_v8 = vld [vmem:[%s2026_s1 + $0x10] sm:$0xff]  ;;  %s1545_s4 = smov [#allocation7]   ;;  %s1272_s17 = sshll.u32 %s2032_s7, 4  ;;  %s1273_s17 = int_to_ptr.hbm [resolvable:$true] %s1272_s17 }
   0xe   :  { %v153_v4 = vld [vmem:[%s2026_s1] sm:$0xff]  ;;  %v154_v6 = vld [vmem:[%s2026_s1 + $0x8] sm:$0xff]  ;;  %v81_v9 = vld [vmem:[%s2025_s0 + $0x10] sm:$0xff] }
   0xf   :  { %198 = vmatpush.msra.mxu1 %v61_v1  ;;  %125 = vmatpush.msra.mxu0 %v61_v1  ;;  %v79_v5 = vld [vmem:[%s2025_s0] sm:$0xff]  ;;  %v80_v7 = vld [vmem:[%s2025_s0 + $0x8] sm:$0xff]  ;;  %v156_v10 = vld [vmem:[%s2026_s1 + $0x18] sm:$0xff] }
  0x10   :  { %v82_v11 = vld [vmem:[%s2025_s0 + $0x18] sm:$0xff]  ;;  %v240_v12 = vld [vmem:[#allocation5 + $0x30] sm:$0xff]  ;;  %v238_v14 = vld [vmem:[#allocation5 + $0x20] sm:$0xff] }
  0x11   :  { %199 = vmatpush.msra.mxu1 %v60_v2  ;;  %126 = vmatpush.msra.mxu0 %v60_v2  ;;  %v241_v13 = vld [vmem:[#allocation5 + $0x38] sm:$0xff]  ;;  %v239_v15 = vld [vmem:[#allocation5 + $0x28] sm:$0xff]  ;;  %v236_v16 = vld [vmem:[#allocation5 + $0x10] sm:$0xff] }
  0x12   :  { %278 = vmatpush.msra.mxu2 %v240_v12  ;;  %319 = vmatpush.msra.mxu3 %v241_v13  ;;  %v237_v17 = vld [vmem:[#allocation5 + $0x18] sm:$0xff]  ;;  %v157_v18 = vld [vmem:[%s2026_s1 + $0x20] sm:$0xff]  ;;  %v158_v20 = vld [vmem:[%s2026_s1 + $0x28] sm:$0xff] }
  0x13   :  { %200 = vmatpush.msra.mxu1 %v59_v3  ;;  %127 = vmatpush.msra.mxu0 %v59_v3  ;;  %v83_v19 = vld [vmem:[%s2025_s0 + $0x20] sm:$0xff]  ;;  %v84_v21 = vld [vmem:[%s2025_s0 + $0x28] sm:$0xff]  ;;  %v159_v22 = vld [vmem:[%s2026_s1 + $0x30] sm:$0xff] }
  0x14   :  { %1291 = vmatmul.msk.f32.vlgmr.msra.gmra.mxu1 %vm87_vm0, %v153_v4  ;;  %1283 = vmatmul.msk.f32.vlgmr.msra.gmra.mxu0 %vm87_vm0, %v79_v5  ;;  %v85_v23 = vld [vmem:[%s2025_s0 + $0x30] sm:$0xff]  ;;  %v160_v24 = vld [vmem:[%s2026_s1 + $0x38] sm:$0xff]  ;;  %v234_v26 = vld [vmem:[#allocation5] sm:$0xff]  ;;  %v1543_v4 = vmov 0.0  }
  0x15   :  { %279 = vmatpush.msra.mxu2 %v238_v14  ;;  %320 = vmatpush.msra.mxu3 %v239_v15  ;;  %v86_v25 = vld [vmem:[%s2025_s0 + $0x38] sm:$0xff]  ;;  %v235_v27 = vld [vmem:[#allocation5 + $0x8] sm:$0xff]  ;;  %v232_v28 = vld [vmem:[%s2028_s3 + $0x30] sm:$0xff] }
  0x16   :  { %v233_v29 = vld [vmem:[%s2028_s3 + $0x38] sm:$0xff]  ;;  %384 = vmatpush.msrb.mxu0 %v232_v28  ;;  %v230_v31 = vld [vmem:[%s2028_s3 + $0x20] sm:$0xff]  ;;  %v231_v32 = vld [vmem:[%s2028_s3 + $0x28] sm:$0xff] }
  0x17   :  { %280 = vmatpush.msra.mxu2 %v236_v16  ;;  %321 = vmatpush.msra.mxu3 %v237_v17  ;;  %v1665_v30 = vld [vmem:[%s2031_s6 + $0x78] sm:$0xff]  ;;  %v228_v33 = vld [vmem:[%s2028_s3 + $0x10] sm:$0xff]  ;;  %v226_v35 = vld [vmem:[%s2028_s3] sm:$0xff] }
  0x18   :  { %425 = vmatpush.msrb.mxu1 %v233_v29  ;;  %v229_v34 = vld [vmem:[%s2028_s3 + $0x18] sm:$0xff]  ;;  %385 = vmatpush.msrb.mxu0 %v230_v31  ;;  %v227_v36 = vld [vmem:[%s2028_s3 + $0x8] sm:$0xff]  ;;  %v1740_v49 = vld [vmem:[%s2031_s6 + $0x70] sm:$0xff]  ;;  %s1270_s3 = sshll.u32 %s1545_s4, 4  ;;  %s1271_s3 = int_to_ptr.vmem [resolvable:$true] %s1270_s3 }
  0x19   :  { %281 = vmatpush.msra.mxu2 %v234_v26  ;;  %322 = vmatpush.msra.mxu3 %v235_v27  ;;  %v1690_v37 = vld [vmem:[%s2031_s6 + $0x68] sm:$0xff]  ;;  %v1697_v38 = vld [vmem:[%s2031_s6 + $0x58] sm:$0xff]  ;;  %v1747_v50 = vld [vmem:[%s2031_s6 + $0x60] sm:$0xff] }
  0x1a   :  { %426 = vmatpush.msrb.mxu1 %v231_v32  ;;  %386 = vmatpush.msrb.mxu0 %v228_v33  ;;  %v1704_v39 = vld [vmem:[%s2031_s6 + $0x48] sm:$0xff]  ;;  %v1713_v42 = vld [vmem:[%s2031_s6 + $0x38] sm:$0xff]  ;;  %v1754_v51 = vld [vmem:[%s2031_s6 + $0x50] sm:$0xff] }
  0x1b   :  { %508 = vmatpush.msrb.mxu3 %v1665_v30  ;;  %v1724_v45 = vld [vmem:[%s2031_s6 + $0x28] sm:$0xff]  ;;  %v1735_v48 = vld [vmem:[%s2031_s6 + $0x18] sm:$0xff]  ;;  %488 = vmatpush.msrb.mxu2 %v1740_v49  ;;  %v1764_v54 = vld [vmem:[%s2031_s6 + $0x40] sm:$0xff] }
  0x1c   :  { %1292 = vmatmul.msk.f32.gmra.mxu1 %vm87_vm0, %v154_v6  ;;  %1284 = vmatmul.msk.f32.gmra.mxu0 %vm87_vm0, %v80_v7  ;;  %v1772_v55 = vld [vmem:[%s2031_s6 + $0x8] sm:$0xff]  ;;  %v1779_v56 = vld [vmem:[%s2031_s6 + $0x30] sm:$0xff]  ;;  %v1786_v57 = vld [vmem:[%s2031_s6 + $0x20] sm:$0xff] }
  0x1d   :  { %427 = vmatpush.msrb.mxu1 %v229_v34  ;;  %387 = vmatpush.msrb.mxu0 %v226_v35  ;;  %v1799_v60 = vld [vmem:[%s2031_s6 + $0x10] sm:$0xff]  ;;  %v1810_v61 = vld [vmem:[%s2031_s6] sm:$0xff] }
  0x1e   :  { %509 = vmatpush.msrb.mxu3 %v1690_v37  ;;  %489 = vmatpush.msrb.mxu2 %v1747_v50 }
  0x1f   :  { %428 = vmatpush.msrb.mxu1 %v227_v36  ;;  %892 = vmatpush.msra.mxu0 %v1740_v49 }
  0x20   :  { %510 = vmatpush.msrb.mxu3 %v1697_v38  ;;  %490 = vmatpush.msrb.mxu2 %v1754_v51 }
  0x21   :  { %912 = vmatpush.msra.mxu1 %v1665_v30  ;;  %893 = vmatpush.msra.mxu0 %v1747_v50 }
  0x22   :  { %511 = vmatpush.msrb.mxu3 %v1704_v39  ;;  %491 = vmatpush.msrb.mxu2 %v1764_v54 }
  0x23   :  { %913 = vmatpush.msra.mxu1 %v1690_v37  ;;  %894 = vmatpush.msra.mxu0 %v1754_v51 }
  0x24   :  { %1293 = vmatmul.msk.f32.gmra.mxu1 %vm87_vm0, %v155_v8  ;;  %1285 = vmatmul.msk.f32.gmra.mxu0 %vm87_vm0, %v81_v9 }
  0x25   :  { %914 = vmatpush.msra.mxu1 %v1697_v38  ;;  %512 = vmatpush.msrb.mxu3 %v1713_v42 }
  0x26   :  { %895 = vmatpush.msra.mxu0 %v1764_v54  ;;  %492 = vmatpush.msrb.mxu2 %v1779_v56 }
  0x27   :  { %915 = vmatpush.msra.mxu1 %v1704_v39  ;;  %513 = vmatpush.msrb.mxu3 %v1724_v45 }
  0x28   :  { %896 = vmatpush.msra.mxu0 %v1779_v56  ;;  %493 = vmatpush.msrb.mxu2 %v1786_v57 }
  0x29   :  { %916 = vmatpush.msra.mxu1 %v1713_v42  ;;  %514 = vmatpush.msrb.mxu3 %v1735_v48 }
  0x2a   :  { %897 = vmatpush.msra.mxu0 %v1786_v57  ;;  %494 = vmatpush.msrb.mxu2 %v1799_v60 }
  0x2b   :  { %917 = vmatpush.msra.mxu1 %v1724_v45  ;;  %515 = vmatpush.msrb.mxu3 %v1772_v55 }
  0x2c   :  { %1294 = vmatmul.msk.f32.gmra.mxu1 %vm87_vm0, %v156_v10  ;;  %1286 = vmatmul.msk.f32.gmra.mxu0 %vm87_vm0, %v82_v11  ;;  %v454_v11 = vld [vmem:[%s2030_s5] sm:$0x3]  ;;  %s1544_s5 = smov 64  }
  0x2d   :  { %918 = vmatpush.msra.mxu1 %v1735_v48  ;;  %898 = vmatpush.msra.mxu0 %v1799_v60  ;;  %v456_v16 = vperm.slane %v454_v11, 0  ;;  %v457_v17 = vperm.slane %v454_v11, 1 }
  0x2e   :  { %495 = vmatpush.msrb.mxu2 %v1810_v61 }
  0x2f   :  { %919 = vmatpush.msra.mxu1 %v1772_v55  ;;  %899 = vmatpush.msra.mxu0 %v1810_v61 }
  0x34   :  { %1295 = vmatmul.msk.f32.gmra.mxu1 %vm87_vm0, %v157_v18  ;;  %1287 = vmatmul.msk.f32.gmra.mxu0 %vm87_vm0, %v83_v19 }
  0x3c   :  { %1296 = vmatmul.msk.f32.gmra.mxu1 %vm87_vm0, %v158_v20  ;;  %1288 = vmatmul.msk.f32.gmra.mxu0 %vm87_vm0, %v84_v21 }
  0x44   :  { %1297 = vmatmul.msk.f32.gmra.mxu1 %vm87_vm0, %v159_v22  ;;  %1289 = vmatmul.msk.f32.gmra.mxu0 %vm87_vm0, %v85_v23 }
  0x4c   :  { %1298 = vmatmul.msk.f32.gmra.mxu1 %vm87_vm0, %v160_v24  ;;  %1290 = vmatmul.msk.f32.gmra.mxu0 %vm87_vm0, %v86_v25 }
  0x91   :  { %v202_v40 = vpop.f32.mrf.mxu1  ;;  %v129_v41 = vpop.f32.mrf.mxu0 }
  0x92   :  { %1299 = vmatmul.msk.f32.vlgmr.msra.gmra.mxu2 %vm87_vm0, %v202_v40  ;;  %1307 = vmatmul.msk.f32.vlgmr.msra.gmra.mxu3 %vm87_vm0, %v202_v40 }
  0x93   :  { %1315 = vmatmul.msk.f32.vlgmr.msrb.gmra.mxu0 %vm87_vm0, %v129_v41  ;;  %1323 = vmatmul.msk.f32.vlgmr.msrb.gmra.mxu1 %vm87_vm0, %v129_v41 }
  0x94   :  { %609 = vmatpush.msra.mxu3 %v1665_v30  ;;  %1114 = vmatpush.msrb.mxu1 %v1665_v30 }
  0x95   :  { %589 = vmatpush.msra.mxu2 %v1740_v49  ;;  %1094 = vmatpush.msrb.mxu0 %v1740_v49 }
  0x96   :  { %610 = vmatpush.msra.mxu3 %v1690_v37  ;;  %1115 = vmatpush.msrb.mxu1 %v1690_v37 }
  0x97   :  { %590 = vmatpush.msra.mxu2 %v1747_v50  ;;  %1095 = vmatpush.msrb.mxu0 %v1747_v50 }
  0x98   :  { %611 = vmatpush.msra.mxu3 %v1697_v38  ;;  %1116 = vmatpush.msrb.mxu1 %v1697_v38 }
  0x99   :  { %v205_v43 = vpop.f32.mrf.mxu1  ;;  %v132_v44 = vpop.f32.mrf.mxu0  ;;  %591 = vmatpush.msra.mxu2 %v1754_v51  ;;  %1096 = vmatpush.msrb.mxu0 %v1754_v51 }
  0x9a   :  { %1300 = vmatmul.msk.f32.gmra.mxu2 %vm87_vm0, %v205_v43  ;;  %1308 = vmatmul.msk.f32.gmra.mxu3 %vm87_vm0, %v205_v43 }
  0x9b   :  { %1316 = vmatmul.msk.f32.gmra.mxu0 %vm87_vm0, %v132_v44  ;;  %1324 = vmatmul.msk.f32.gmra.mxu1 %vm87_vm0, %v132_v44 }
  0x9c   :  { %612 = vmatpush.msra.mxu3 %v1704_v39  ;;  %1117 = vmatpush.msrb.mxu1 %v1704_v39 }
  0x9d   :  { %592 = vmatpush.msra.mxu2 %v1764_v54  ;;  %1097 = vmatpush.msrb.mxu0 %v1764_v54 }
  0x9e   :  { %613 = vmatpush.msra.mxu3 %v1713_v42  ;;  %1118 = vmatpush.msrb.mxu1 %v1713_v42 }
  0x9f   :  { %593 = vmatpush.msra.mxu2 %v1779_v56  ;;  %1098 = vmatpush.msrb.mxu0 %v1779_v56 }
  0xa0   :  { %614 = vmatpush.msra.mxu3 %v1724_v45  ;;  %1119 = vmatpush.msrb.mxu1 %v1724_v45 }
  0xa1   :  { %v208_v46 = vpop.f32.mrf.mxu1  ;;  %v135_v47 = vpop.f32.mrf.mxu0  ;;  %594 = vmatpush.msra.mxu2 %v1786_v57  ;;  %1099 = vmatpush.msrb.mxu0 %v1786_v57 }
  0xa2   :  { %1301 = vmatmul.msk.f32.gmra.mxu2 %vm87_vm0, %v208_v46  ;;  %1309 = vmatmul.msk.f32.gmra.mxu3 %vm87_vm0, %v208_v46 }
  0xa3   :  { %1317 = vmatmul.msk.f32.gmra.mxu0 %vm87_vm0, %v135_v47  ;;  %1325 = vmatmul.msk.f32.gmra.mxu1 %vm87_vm0, %v135_v47 }
  0xa4   :  { %615 = vmatpush.msra.mxu3 %v1735_v48  ;;  %1120 = vmatpush.msrb.mxu1 %v1735_v48 }
  0xa5   :  { %595 = vmatpush.msra.mxu2 %v1799_v60  ;;  %1100 = vmatpush.msrb.mxu0 %v1799_v60 }
  0xa6   :  { %616 = vmatpush.msra.mxu3 %v1772_v55  ;;  %1121 = vmatpush.msrb.mxu1 %v1772_v55 }
  0xa7   :  { %596 = vmatpush.msra.mxu2 %v1810_v61  ;;  %1101 = vmatpush.msrb.mxu0 %v1810_v61 }
  0xa9   :  { %v211_v52 = vpop.f32.mrf.mxu1  ;;  %v138_v53 = vpop.f32.mrf.mxu0 }
  0xaa   :  { %1302 = vmatmul.msk.f32.gmra.mxu2 %vm87_vm0, %v211_v52  ;;  %1310 = vmatmul.msk.f32.gmra.mxu3 %vm87_vm0, %v211_v52 }
  0xab   :  { %1318 = vmatmul.msk.f32.gmra.mxu0 %vm87_vm0, %v138_v53  ;;  %1326 = vmatmul.msk.f32.gmra.mxu1 %vm87_vm0, %v138_v53 }
  0xb1   :  { %v214_v58 = vpop.f32.mrf.mxu1  ;;  %v141_v59 = vpop.f32.mrf.mxu0 }
  0xb2   :  { %1303 = vmatmul.msk.f32.gmra.mxu2 %vm87_vm0, %v214_v58  ;;  %1311 = vmatmul.msk.f32.gmra.mxu3 %vm87_vm0, %v214_v58 }
  0xb3   :  { %1319 = vmatmul.msk.f32.gmra.mxu0 %vm87_vm0, %v141_v59  ;;  %1327 = vmatmul.msk.f32.gmra.mxu1 %vm87_vm0, %v141_v59 }
  0xb9   :  { %v217_v62 = vpop.f32.mrf.mxu1  ;;  %v144_v63 = vpop.f32.mrf.mxu0 }
  0xba   :  { %1304 = vmatmul.msk.f32.gmra.mxu2 %vm87_vm0, %v217_v62  ;;  %1312 = vmatmul.msk.f32.gmra.mxu3 %vm87_vm0, %v217_v62 }
  0xbb   :  { %1320 = vmatmul.msk.f32.gmra.mxu0 %vm87_vm0, %v144_v63  ;;  %1328 = vmatmul.msk.f32.gmra.mxu1 %vm87_vm0, %v144_v63 }
  0xc1   :  { %v220_v0 = vpop.f32.mrf.mxu1  ;;  %v147_v1 = vpop.f32.mrf.mxu0 }
  0xc2   :  { %1305 = vmatmul.msk.f32.gmra.mxu2 %vm87_vm0, %v220_v0  ;;  %1313 = vmatmul.msk.f32.gmra.mxu3 %vm87_vm0, %v220_v0 }
  0xc3   :  { %1321 = vmatmul.msk.f32.gmra.mxu0 %vm87_vm0, %v147_v1  ;;  %1329 = vmatmul.msk.f32.gmra.mxu1 %vm87_vm0, %v147_v1 }
  0xc9   :  { %v223_v2 = vpop.f32.mrf.mxu1  ;;  %v150_v3 = vpop.f32.mrf.mxu0 }
  0xca   :  { %1306 = vmatmul.msk.f32.gmra.mxu2 %vm87_vm0, %v223_v2  ;;  %1314 = vmatmul.msk.f32.gmra.mxu3 %vm87_vm0, %v223_v2 }
  0xcb   :  { %1322 = vmatmul.msk.f32.gmra.mxu0 %vm87_vm0, %v150_v3  ;;  %1330 = vmatmul.msk.f32.gmra.mxu1 %vm87_vm0, %v150_v3 }
  0xd2   :  { %496 = vmatmul.f32.vlgmr.msrb.gmra.mxu2 %v1543_v4  ;;  %516 = vmatmul.f32.vlgmr.msrb.gmra.mxu3 %v1543_v4 }
  0xd3   :  { %690 = vmatpush.msrb.mxu2 %v1740_v49  ;;  %710 = vmatpush.msrb.mxu3 %v1665_v30 }
  0xd5   :  { %691 = vmatpush.msrb.mxu2 %v1747_v50  ;;  %711 = vmatpush.msrb.mxu3 %v1690_v37 }
  0xd7   :  { %692 = vmatpush.msrb.mxu2 %v1754_v51  ;;  %712 = vmatpush.msrb.mxu3 %v1697_v38 }
  0xd9   :  { %693 = vmatpush.msrb.mxu2 %v1764_v54  ;;  %713 = vmatpush.msrb.mxu3 %v1704_v39 }
  0xdb   :  { %694 = vmatpush.msrb.mxu2 %v1779_v56  ;;  %714 = vmatpush.msrb.mxu3 %v1713_v42 }
  0xdd   :  { %695 = vmatpush.msrb.mxu2 %v1786_v57  ;;  %715 = vmatpush.msrb.mxu3 %v1724_v45 }
  0xdf   :  { %696 = vmatpush.msrb.mxu2 %v1799_v60  ;;  %716 = vmatpush.msrb.mxu3 %v1735_v48 }
  0xe1   :  { %697 = vmatpush.msrb.mxu2 %v1810_v61  ;;  %717 = vmatpush.msrb.mxu3 %v1772_v55 }
 0x110   :  { %v1872_v5 = vpop.f32.mrf.mxu0  ;;  %v430_v6 = vpop.f32.mrf.mxu1 }
 0x115   :  { %v1874_v7 = vpop.f32.mrf.mxu2  ;;  %v324_v8 = vpop.f32.mrf.mxu3 }
 0x118   :  { %v392_v9 = vpop.f32.mrf.mxu0  ;;  %v433_v10 = vpop.f32.mrf.mxu1 }
 0x11d   :  { %v286_v12 = vpop.f32.mrf.mxu2  ;;  %v327_v13 = vpop.f32.mrf.mxu3 }
 0x11e   :  { %v393_v14 = vadd.f32 %v392_v9, %v286_v12  ;;  %v434_v15 = vadd.f32 %v433_v10, %v327_v13 }
 0x120   :  { %v395_v18 = vpop.f32.mrf.mxu0  ;;  %v436_v19 = vpop.f32.mrf.mxu1  ;;  %v1879_v20 = vadd.f32 %v456_v16, %v393_v14  ;;  %v1881_v21 = vadd.f32 %v457_v17, %v434_v15 }
 0x125   :  { %v289_v22 = vpop.f32.mrf.mxu2  ;;  %v330_v23 = vpop.f32.mrf.mxu3 }
 0x126   :  { %v396_v24 = vadd.f32 %v395_v18, %v289_v22  ;;  %v437_v25 = vadd.f32 %v436_v19, %v330_v23 }
 0x128   :  { %v398_v26 = vpop.f32.mrf.mxu0  ;;  %v439_v27 = vpop.f32.mrf.mxu1  ;;  %v1883_v28 = vadd.f32 %v456_v16, %v396_v24  ;;  %v1885_v29 = vadd.f32 %v457_v17, %v437_v25 }
 0x12d   :  { %v292_v31 = vpop.f32.mrf.mxu2  ;;  %v333_v32 = vpop.f32.mrf.mxu3 }
 0x12e   :  { %v399_v33 = vadd.f32 %v398_v26, %v292_v31  ;;  %v440_v34 = vadd.f32 %v439_v27, %v333_v32  ;;  %v431_v26 = vadd.f32 %v430_v6, %v324_v8 }
 0x130   :  { %v401_v35 = vpop.f32.mrf.mxu0  ;;  %v442_v36 = vpop.f32.mrf.mxu1  ;;  %v1887_v40 = vadd.f32 %v456_v16, %v399_v33  ;;  %v1889_v41 = vadd.f32 %v457_v17, %v440_v34  ;;  %v461_v32 = vadd.f32 %v457_v17, %v431_v26 }
 0x135   :  { %v295_v43 = vpop.f32.mrf.mxu2  ;;  %v336_v44 = vpop.f32.mrf.mxu3 }
 0x136   :  { %v402_v46 = vadd.f32 %v401_v35, %v295_v43  ;;  %v443_v47 = vadd.f32 %v442_v36, %v336_v44  ;;  %v390_v36 = vadd.f32 %v1872_v5, %v1874_v7 }
 0x138   :  { %v404_v52 = vpop.f32.mrf.mxu0  ;;  %v445_v53 = vpop.f32.mrf.mxu1  ;;  %v1891_v58 = vadd.f32 %v456_v16, %v402_v46  ;;  %v1893_v59 = vadd.f32 %v457_v17, %v443_v47  ;;  %v460_v44 = vadd.f32 %v456_v16, %v390_v36 }
 0x13d   :  { %v298_v62 = vpop.f32.mrf.mxu2  ;;  %v339_v63 = vpop.f32.mrf.mxu3 }
 0x13e   :  { %v405_v0 = vadd.f32 %v404_v52, %v298_v62  ;;  %v446_v1 = vadd.f32 %v445_v53, %v339_v63 }
 0x140   :  { %v1895_v2 = vadd.f32 %v456_v16, %v405_v0  ;;  %v1897_v3 = vadd.f32 %v457_v17, %v446_v1  ;;  %v407_v4 = vpop.f32.mrf.mxu0  ;;  %v448_v9 = vpop.f32.mrf.mxu1 }
 0x145   :  { %v301_v10 = vpop.f32.mrf.mxu2  ;;  %v342_v11 = vpop.f32.mrf.mxu3 }
 0x146   :  { %v408_v12 = vadd.f32 %v407_v4, %v301_v10  ;;  %v449_v13 = vadd.f32 %v448_v9, %v342_v11 }
 0x148   :  { %v1899_v14 = vadd.f32 %v456_v16, %v408_v12  ;;  %v1901_v15 = vadd.f32 %v457_v17, %v449_v13  ;;  %v410_v18 = vpop.f32.mrf.mxu0  ;;  %v451_v19 = vpop.f32.mrf.mxu1 }
 0x14d   :  { %v304_v22 = vpop.f32.mrf.mxu2  ;;  %v345_v23 = vpop.f32.mrf.mxu3 }
 0x14e   :  { %v411_v24 = vadd.f32 %v410_v18, %v304_v22  ;;  %v452_v25 = vadd.f32 %v451_v19, %v345_v23 }
 0x150   :  { %v1903_v27 = vadd.f32 %v456_v16, %v411_v24  ;;  %v1905_v31 = vadd.f32 %v457_v17, %v452_v25 }
 0x155   :  { %v517_v33 = vpop.f32.mrf.mxu3  ;;  %v497_v43 = vpop.f32.mrf.mxu2 }
 0x156   :  { %v521_v34 = vadd.f32 %v517_v33, %v461_v32  ;;  %v520_v46 = vadd.f32 %v497_v43, %v460_v44 }
 0x158   :  { %1369 = vtanh.f32 %v521_v34  ;;  %v1331_v47 = vmul.f32 -1.442695, %v520_v46  ;;  %v1332_v18 = vmul.f32 -1.442695, %v521_v34 }
 0x15a   :  { %1371 = vpow2.f32 %v1331_v47 }
 0x15e   :  { %v1370_v35 = vpop.eup %1369 }
 0x15f   :  { %563 = vrot.lane.b32.xlu0 %v1370_v35, %s1544_s5 }
 0x160   :  { %v1372_v6 = vpop.eup %1371 }
 0x161   :  { %v528_v8 = vadd.f32 1.0, %v1372_v6 }
 0x163   :  { %1373 = vrcp.f32 %v528_v8  ;;  %v541_v0 = vand.u32 2147483648, %v528_v8  ;;  %vm535_vm2 = vweird.f32 %v528_v8  ;;  %v539_v1 = vand.u32 2147483647, %v528_v8 }
 0x165   :  { %v542_v5 = vor.u32 1.1754944e-38, %v541_v0  ;;  %vm540_vm4 = vcmp.eq.f32.partialorder %v539_v1, 8.507059e+37 }
 0x169   :  { %v1374_v52 = vpop.eup %1373 }
 0x16a   :  { %v531_v17 = vmul.f32 %v1374_v52, %v528_v8  ;;  %vm536_vm1 = vweird.f32 %v1374_v52 }
 0x16b   :  { %vm537_vm3 = vmor %vm535_vm2, %vm536_vm1 }
 0x16c   :  { %v532_v53 = vsub.f32 1.0, %v531_v17 }
 0x16e   :  { %v533_v62 = vmul.f32 %v1374_v52, %v532_v53 }
 0x170   :  { %v534_v63 = vadd.f32 %v1374_v52, %v533_v62 }
 0x172   :  { %v538_v4 = vsel %vm537_vm3, %v1374_v52, %v534_v63 }
 0x173   :  { %v543_v16 = vsel %vm540_vm4, %v542_v5, %v538_v4 }
 0x174   :  { %v561_v10 = vmul.f32 0.0, %v543_v16 }
 0x1d1   :  { %v564_v7 = vpop.permute.xlu0 %563 }
 0x1d2   :  { %v566_v9 = vmul.f32 %v564_v7, %v543_v16 }
 0x1d4   :  { %568 = vrot.lane.b32.xlu0 %v566_v9, %s1544_s5 }
 0x246   :  { %v569_v11 = vpop.permute.xlu0 %568 }
 0x247   :  { %v1911_v12 = vadd.f32 %v569_v11, %v561_v10 }
 0x249   :  { %1375 = vtanh.f32 %v1911_v12 }
 0x24a   :  { %1377 = vpow2.f32 %v1332_v18 }
 0x24f   :  { %v1376_v13 = vpop.eup %1375 }
 0x250   :  { %574 = vrot.lane.b32.xlu1 %v1376_v13, %s1544_s5  ;;  %v1378_v19 = vpop.eup %1377 }
 0x251   :  { %v529_v22 = vadd.f32 1.0, %v1378_v19 }
 0x253   :  { %1379 = vrcp.f32 %v529_v22  ;;  %v556_v33 = vand.u32 2147483648, %v529_v22  ;;  %vm550_vm6 = vweird.f32 %v529_v22  ;;  %v554_v35 = vand.u32 2147483647, %v529_v22 }
 0x255   :  { %v557_v43 = vor.u32 1.1754944e-38, %v556_v33  ;;  %vm555_vm8 = vcmp.eq.f32.partialorder %v554_v35, 8.507059e+37 }
 0x259   :  { %v1380_v23 = vpop.eup %1379 }
 0x25a   :  { %v546_v24 = vmul.f32 %v1380_v23, %v529_v22  ;;  %vm551_vm5 = vweird.f32 %v1380_v23 }
 0x25b   :  { %vm552_vm7 = vmor %vm550_vm6, %vm551_vm5 }
 0x25c   :  { %v547_v25 = vsub.f32 1.0, %v546_v24 }
 0x25e   :  { %v548_v26 = vmul.f32 %v1380_v23, %v547_v25 }
 0x260   :  { %v549_v32 = vadd.f32 %v1380_v23, %v548_v26 }
 0x262   :  { %v553_v36 = vsel %vm552_vm7, %v1380_v23, %v549_v32 }
 0x263   :  { %v558_v44 = vsel %vm555_vm8, %v557_v43, %v553_v36 }
 0x2c2   :  { %v575_v46 = vpop.permute.xlu1 %574 }
 0x2c3   :  { %v577_v34 = vmul.f32 %v575_v46, %v558_v44 }
 0x2c5   :  { %1333 = vmatmul.msk.f32.vlgmr.msra.gmra.mxu2 %vm476_vm9, %v577_v34  ;;  %1334 = vmatmul.msk.f32.vlgmr.msra.gmra.mxu3 %vm476_vm9, %v577_v34 }
 0x2c6   :  { %791 = vmatpush.msra.mxu2 %v1740_v49  ;;  %811 = vmatpush.msra.mxu3 %v1665_v30 }
 0x2c8   :  { %792 = vmatpush.msra.mxu2 %v1747_v50  ;;  %812 = vmatpush.msra.mxu3 %v1690_v37 }
 0x2ca   :  { %793 = vmatpush.msra.mxu2 %v1754_v51  ;;  %813 = vmatpush.msra.mxu3 %v1697_v38 }
 0x2cc   :  { %794 = vmatpush.msra.mxu2 %v1764_v54  ;;  %814 = vmatpush.msra.mxu3 %v1704_v39 }
 0x2ce   :  { %795 = vmatpush.msra.mxu2 %v1779_v56  ;;  %815 = vmatpush.msra.mxu3 %v1713_v42 }
 0x2d0   :  { %796 = vmatpush.msra.mxu2 %v1786_v57  ;;  %816 = vmatpush.msra.mxu3 %v1724_v45 }
 0x2d2   :  { %797 = vmatpush.msra.mxu2 %v1799_v60  ;;  %817 = vmatpush.msra.mxu3 %v1735_v48 }
 0x2d4   :  { %798 = vmatpush.msra.mxu2 %v1810_v61  ;;  %818 = vmatpush.msra.mxu3 %v1772_v55 }
 0x348   :  { %v618_v47 = vpop.f32.mrf.mxu3  ;;  %v598_v52 = vpop.f32.mrf.mxu2 }
 0x349   :  { %v622_v6 = vadd.f32 %v618_v47, %v1881_v21  ;;  %v621_v17 = vadd.f32 %v598_v52, %v1879_v20 }
 0x34b   :  { %1381 = vtanh.f32 %v622_v6  ;;  %v1335_v53 = vmul.f32 -1.442695, %v621_v17  ;;  %v1336_v24 = vmul.f32 -1.442695, %v622_v6 }
 0x34d   :  { %1383 = vpow2.f32 %v1335_v53 }
 0x351   :  { %v1382_v8 = vpop.eup %1381 }
 0x352   :  { %664 = vrot.lane.b32.xlu1 %v1382_v8, %s1544_s5 }
 0x353   :  { %v1384_v62 = vpop.eup %1383 }
 0x354   :  { %v629_v63 = vadd.f32 1.0, %v1384_v62 }
 0x356   :  { %1385 = vrcp.f32 %v629_v63  ;;  %v642_v16 = vand.u32 2147483648, %v629_v63  ;;  %vm636_vm11 = vweird.f32 %v629_v63  ;;  %v640_v21 = vand.u32 2147483647, %v629_v63 }
 0x358   :  { %v643_v10 = vor.u32 1.1754944e-38, %v642_v16  ;;  %vm641_vm13 = vcmp.eq.f32.partialorder %v640_v21, 8.507059e+37 }
 0x35c   :  { %v1386_v0 = vpop.eup %1385 }
 0x35d   :  { %v632_v1 = vmul.f32 %v1386_v0, %v629_v63  ;;  %vm637_vm10 = vweird.f32 %v1386_v0 }
 0x35e   :  { %vm638_vm12 = vmor %vm636_vm11, %vm637_vm10 }
 0x35f   :  { %v633_v4 = vsub.f32 1.0, %v632_v1 }
 0x361   :  { %v634_v5 = vmul.f32 %v1386_v0, %v633_v4 }
 0x363   :  { %v635_v7 = vadd.f32 %v1386_v0, %v634_v5 }
 0x365   :  { %v639_v9 = vsel %vm638_vm12, %v1386_v0, %v635_v7 }
 0x366   :  { %v644_v20 = vsel %vm641_vm13, %v643_v10, %v639_v9 }
 0x367   :  { %v662_v18 = vmul.f32 %v644_v20, %v1911_v12 }
 0x3c4   :  { %v665_v11 = vpop.permute.xlu1 %664 }
 0x3c5   :  { %v667_v13 = vmul.f32 %v665_v11, %v644_v20 }
 0x3c7   :  { %669 = vrot.lane.b32.xlu2 %v667_v13, %s1544_s5 }
 0x421   :  { %v670_v19 = vpop.permute.xlu2 %669 }
 0x422   :  { %v1938_v22 = vadd.f32 %v670_v19, %v662_v18 }
 0x424   :  { %1387 = vtanh.f32 %v1938_v22 }
 0x425   :  { %1389 = vpow2.f32 %v1336_v24 }
 0x42a   :  { %v1388_v23 = vpop.eup %1387 }
 0x42b   :  { %675 = vrot.lane.b32.xlu2 %v1388_v23, %s1544_s5  ;;  %v1390_v25 = vpop.eup %1389 }
 0x42c   :  { %v630_v26 = vadd.f32 1.0, %v1390_v25 }
 0x42e   :  { %1391 = vrcp.f32 %v630_v26  ;;  %v657_v12 = vand.u32 2147483648, %v630_v26  ;;  %vm651_vm15 = vweird.f32 %v630_v26  ;;  %v655_v44 = vand.u32 2147483647, %v630_v26 }
 0x430   :  { %v658_v34 = vor.u32 1.1754944e-38, %v657_v12  ;;  %vm656_vm1 = vcmp.eq.f32.partialorder %v655_v44, 8.507059e+37 }
 0x434   :  { %v1392_v32 = vpop.eup %1391 }
 0x435   :  { %v647_v33 = vmul.f32 %v1392_v32, %v630_v26  ;;  %vm652_vm14 = vweird.f32 %v1392_v32 }
 0x436   :  { %vm653_vm0 = vmor %vm651_vm15, %vm652_vm14 }
 0x437   :  { %v648_v35 = vsub.f32 1.0, %v647_v33 }
 0x439   :  { %v649_v36 = vmul.f32 %v1392_v32, %v648_v35 }
 0x43b   :  { %v650_v43 = vadd.f32 %v1392_v32, %v649_v36 }
 0x43d   :  { %v654_v46 = vsel %vm653_vm0, %v1392_v32, %v650_v43 }
 0x43e   :  { %v659_v47 = vsel %vm656_vm1, %v658_v34, %v654_v46 }
 0x485   :  { %v676_v8 = vpop.permute.xlu2 %675 }
 0x486   :  { %v678_v6 = vmul.f32 %v676_v8, %v659_v47 }
 0x488   :  { %1337 = vmatmul.msk.f32.vlgmr.msrb.gmra.mxu2 %vm476_vm9, %v678_v6  ;;  %1338 = vmatmul.msk.f32.vlgmr.msrb.gmra.mxu3 %vm476_vm9, %v678_v6 }
 0x489   :  { %993 = vmatpush.msrb.mxu2 %v1740_v49  ;;  %1013 = vmatpush.msrb.mxu3 %v1665_v30 }
 0x48b   :  { %994 = vmatpush.msrb.mxu2 %v1747_v50  ;;  %1014 = vmatpush.msrb.mxu3 %v1690_v37 }
 0x48d   :  { %995 = vmatpush.msrb.mxu2 %v1754_v51  ;;  %1015 = vmatpush.msrb.mxu3 %v1697_v38 }
 0x48f   :  { %996 = vmatpush.msrb.mxu2 %v1764_v54  ;;  %1016 = vmatpush.msrb.mxu3 %v1704_v39 }
 0x491   :  { %997 = vmatpush.msrb.mxu2 %v1779_v56  ;;  %1017 = vmatpush.msrb.mxu3 %v1713_v42 }
 0x493   :  { %998 = vmatpush.msrb.mxu2 %v1786_v57  ;;  %1018 = vmatpush.msrb.mxu3 %v1724_v45 }
 0x495   :  { %999 = vmatpush.msrb.mxu2 %v1799_v60  ;;  %1019 = vmatpush.msrb.mxu3 %v1735_v48 }
 0x497   :  { %1000 = vmatpush.msrb.mxu2 %v1810_v61  ;;  %1020 = vmatpush.msrb.mxu3 %v1772_v55 }
 0x50b   :  { %v719_v52 = vpop.f32.mrf.mxu3  ;;  %v699_v62 = vpop.f32.mrf.mxu2 }
 0x50c   :  { %v723_v17 = vadd.f32 %v719_v52, %v1885_v29  ;;  %v722_v63 = vadd.f32 %v699_v62, %v1883_v28 }
 0x50e   :  { %1393 = vtanh.f32 %v723_v17  ;;  %v1339_v0 = vmul.f32 -1.442695, %v722_v63  ;;  %v1340_v26 = vmul.f32 -1.442695, %v723_v17 }
 0x510   :  { %1395 = vpow2.f32 %v1339_v0 }
 0x514   :  { %v1394_v53 = vpop.eup %1393 }
 0x515   :  { %765 = vrot.lane.b32.xlu0 %v1394_v53, %s1544_s5 }
 0x516   :  { %v1396_v1 = vpop.eup %1395 }
 0x517   :  { %v730_v4 = vadd.f32 1.0, %v1396_v1 }
 0x519   :  { %1397 = vrcp.f32 %v730_v4  ;;  %v743_v10 = vand.u32 2147483648, %v730_v4  ;;  %vm737_vm3 = vweird.f32 %v730_v4  ;;  %v741_v29 = vand.u32 2147483647, %v730_v4 }
 0x51b   :  { %v744_v20 = vor.u32 1.1754944e-38, %v743_v10  ;;  %vm742_vm5 = vcmp.eq.f32.partialorder %v741_v29, 8.507059e+37 }
 0x51f   :  { %v1398_v5 = vpop.eup %1397 }
 0x520   :  { %v733_v7 = vmul.f32 %v1398_v5, %v730_v4  ;;  %vm738_vm2 = vweird.f32 %v1398_v5 }
 0x521   :  { %vm739_vm4 = vmor %vm737_vm3, %vm738_vm2 }
 0x522   :  { %v734_v16 = vsub.f32 1.0, %v733_v7 }
 0x524   :  { %v735_v21 = vmul.f32 %v1398_v5, %v734_v16 }
 0x526   :  { %v736_v9 = vadd.f32 %v1398_v5, %v735_v21 }
 0x528   :  { %v740_v11 = vsel %vm739_vm4, %v1398_v5, %v736_v9 }
 0x529   :  { %v745_v28 = vsel %vm742_vm5, %v744_v20, %v740_v11 }
 0x52a   :  { %v763_v19 = vmul.f32 %v745_v28, %v1938_v22 }
 0x587   :  { %v766_v13 = vpop.permute.xlu0 %765 }
 0x588   :  { %v768_v18 = vmul.f32 %v766_v13, %v745_v28 }
 0x58a   :  { %770 = vrot.lane.b32.xlu1 %v768_v18, %s1544_s5 }
 0x5fc   :  { %v771_v23 = vpop.permute.xlu1 %770 }
 0x5fd   :  { %v1965_v24 = vadd.f32 %v771_v23, %v763_v19 }
 0x5ff   :  { %1399 = vtanh.f32 %v1965_v24 }
 0x600   :  { %1401 = vpow2.f32 %v1340_v26 }
 0x605   :  { %v1400_v25 = vpop.eup %1399 }
 0x606   :  { %776 = vrot.lane.b32.xlu2 %v1400_v25, %s1544_s5  ;;  %v1402_v32 = vpop.eup %1401 }
 0x607   :  { %v731_v33 = vadd.f32 1.0, %v1402_v32 }
 0x609   :  { %1403 = vrcp.f32 %v731_v33  ;;  %v758_v22 = vand.u32 2147483648, %v731_v33  ;;  %vm752_vm7 = vweird.f32 %v731_v33  ;;  %v756_v46 = vand.u32 2147483647, %v731_v33 }
 0x60b   :  { %v759_v47 = vor.u32 1.1754944e-38, %v758_v22  ;;  %vm757_vm10 = vcmp.eq.f32.partialorder %v756_v46, 8.507059e+37 }
 0x60f   :  { %v1404_v35 = vpop.eup %1403 }
 0x610   :  { %v748_v36 = vmul.f32 %v1404_v35, %v731_v33  ;;  %vm753_vm6 = vweird.f32 %v1404_v35 }
 0x611   :  { %vm754_vm8 = vmor %vm752_vm7, %vm753_vm6 }
 0x612   :  { %v749_v43 = vsub.f32 1.0, %v748_v36 }
 0x614   :  { %v750_v12 = vmul.f32 %v1404_v35, %v749_v43 }
 0x616   :  { %v751_v44 = vadd.f32 %v1404_v35, %v750_v12 }
 0x618   :  { %v755_v34 = vsel %vm754_vm8, %v1404_v35, %v751_v44 }
 0x619   :  { %v760_v8 = vsel %vm757_vm10, %v759_v47, %v755_v34 }
 0x660   :  { %v777_v6 = vpop.permute.xlu2 %776 }
 0x661   :  { %v779_v52 = vmul.f32 %v777_v6, %v760_v8 }
 0x663   :  { %1341 = vmatmul.msk.f32.vlgmr.msra.gmra.mxu2 %vm476_vm9, %v779_v52  ;;  %1342 = vmatmul.msk.f32.vlgmr.msra.gmra.mxu3 %vm476_vm9, %v779_v52 }
 0x664   :  { %1195 = vmatpush.msra.mxu2 %v1740_v49  ;;  %1215 = vmatpush.msra.mxu3 %v1665_v30 }
 0x666   :  { %1196 = vmatpush.msra.mxu2 %v1747_v50  ;;  %1216 = vmatpush.msra.mxu3 %v1690_v37 }
 0x668   :  { %1197 = vmatpush.msra.mxu2 %v1754_v51  ;;  %1217 = vmatpush.msra.mxu3 %v1697_v38 }
 0x66a   :  { %1198 = vmatpush.msra.mxu2 %v1764_v54  ;;  %1218 = vmatpush.msra.mxu3 %v1704_v39 }
 0x66c   :  { %1199 = vmatpush.msra.mxu2 %v1779_v56  ;;  %1219 = vmatpush.msra.mxu3 %v1713_v42 }
 0x66e   :  { %1200 = vmatpush.msra.mxu2 %v1786_v57  ;;  %1220 = vmatpush.msra.mxu3 %v1724_v45 }
 0x670   :  { %1201 = vmatpush.msra.mxu2 %v1799_v60  ;;  %1221 = vmatpush.msra.mxu3 %v1735_v48 }
 0x672   :  { %1202 = vmatpush.msra.mxu2 %v1810_v61  ;;  %1222 = vmatpush.msra.mxu3 %v1772_v55 }
 0x6e6   :  { %v820_v30 = vpop.f32.mrf.mxu3  ;;  %v800_v39 = vpop.f32.mrf.mxu2 }
 0x6e7   :  { %v824_v37 = vadd.f32 %v820_v30, %v1889_v41  ;;  %v823_v42 = vadd.f32 %v800_v39, %v1887_v40 }
 0x6e9   :  { %1405 = vtanh.f32 %v824_v37  ;;  %v1343_v49 = vmul.f32 -1.442695, %v823_v42  ;;  %v1344_v4 = vmul.f32 -1.442695, %v824_v37 }
 0x6eb   :  { %1407 = vpow2.f32 %v1343_v49 }
 0x6ef   :  { %v1406_v38 = vpop.eup %1405 }
 0x6f0   :  { %866 = vrot.lane.b32.xlu0 %v1406_v38, %s1544_s5 }
 0x6f1   :  { %v1408_v45 = vpop.eup %1407 }
 0x6f2   :  { %v831_v50 = vadd.f32 1.0, %v1408_v45 }
 0x6f4   :  { %1409 = vrcp.f32 %v831_v50  ;;  %v844_v57 = vand.u32 2147483648, %v831_v50  ;;  %vm838_vm12 = vweird.f32 %v831_v50  ;;  %v842_v60 = vand.u32 2147483647, %v831_v50 }
 0x6f6   :  { %v845_v41 = vor.u32 1.1754944e-38, %v844_v57  ;;  %vm843_vm14 = vcmp.eq.f32.partialorder %v842_v60, 8.507059e+37 }
 0x6fa   :  { %v1410_v48 = vpop.eup %1409 }
 0x6fb   :  { %v834_v51 = vmul.f32 %v1410_v48, %v831_v50  ;;  %vm839_vm11 = vweird.f32 %v1410_v48 }
 0x6fc   :  { %vm840_vm13 = vmor %vm838_vm12, %vm839_vm11 }
 0x6fd   :  { %v835_v54 = vsub.f32 1.0, %v834_v51 }
 0x6ff   :  { %v836_v56 = vmul.f32 %v1410_v48, %v835_v54 }
 0x701   :  { %v837_v55 = vadd.f32 %v1410_v48, %v836_v56 }
 0x703   :  { %v841_v61 = vsel %vm840_vm13, %v1410_v48, %v837_v55 }
 0x704   :  { %v846_v40 = vsel %vm843_vm14, %v845_v41, %v841_v61 }
 0x705   :  { %v864_v62 = vmul.f32 %v846_v40, %v1965_v24 }
 0x762   :  { %v867_v17 = vpop.permute.xlu0 %866 }
 0x763   :  { %v869_v53 = vmul.f32 %v867_v17, %v846_v40 }
 0x765   :  { %871 = vrot.lane.b32.xlu1 %v869_v53, %s1544_s5 }
 0x7d7   :  { %v872_v63 = vpop.permute.xlu1 %871 }
 0x7d8   :  { %v874_v0 = vadd.f32 %v872_v63, %v864_v62 }
 0x7da   :  { %1411 = vtanh.f32 %v874_v0 }
 0x7db   :  { %1413 = vpow2.f32 %v1344_v4 }
 0x7e0   :  { %v1412_v1 = vpop.eup %1411 }
 0x7e1   :  { %877 = vrot.lane.b32.xlu2 %v1412_v1, %s1544_s5  ;;  %v1414_v5 = vpop.eup %1413 }
 0x7e2   :  { %v832_v7 = vadd.f32 1.0, %v1414_v5 }
 0x7e4   :  { %1415 = vrcp.f32 %v832_v7  ;;  %v859_v11 = vand.u32 2147483648, %v832_v7  ;;  %vm853_vm0 = vweird.f32 %v832_v7  ;;  %v857_v20 = vand.u32 2147483647, %v832_v7 }
 0x7e6   :  { %v860_v28 = vor.u32 1.1754944e-38, %v859_v11  ;;  %vm858_vm2 = vcmp.eq.f32.partialorder %v857_v20, 8.507059e+37 }
 0x7ea   :  { %v1416_v16 = vpop.eup %1415 }
 0x7eb   :  { %v849_v21 = vmul.f32 %v1416_v16, %v832_v7  ;;  %vm854_vm15 = vweird.f32 %v1416_v16 }
 0x7ec   :  { %vm855_vm1 = vmor %vm853_vm0, %vm854_vm15 }
 0x7ed   :  { %v850_v9 = vsub.f32 1.0, %v849_v21 }
 0x7ef   :  { %v851_v10 = vmul.f32 %v1416_v16, %v850_v9 }
 0x7f1   :  { %v852_v29 = vadd.f32 %v1416_v16, %v851_v10 }
 0x7f3   :  { %v856_v13 = vsel %vm855_vm1, %v1416_v16, %v852_v29 }
 0x7f4   :  { %v861_v18 = vsel %vm858_vm2, %v860_v28, %v856_v13 }
 0x83b   :  { %v878_v19 = vpop.permute.xlu2 %877 }
 0x83c   :  { %v880_v23 = vmul.f32 %v878_v19, %v861_v18 }
 0x83e   :  { %1345 = vmatmul.msk.f32.vlgmr.msra.gmra.mxu0 %vm476_vm9, %v880_v23  ;;  %1346 = vmatmul.msk.f32.vlgmr.msra.gmra.mxu1 %vm476_vm9, %v880_v23 }
 0x8bb   :  { %v921_v24 = vpop.f32.mrf.mxu1  ;;  %v901_v32 = vpop.f32.mrf.mxu0 }
 0x8bc   :  { %v925_v25 = vadd.f32 %v921_v24, %v1893_v59  ;;  %v924_v33 = vadd.f32 %v901_v32, %v1891_v58 }
 0x8be   :  { %1417 = vtanh.f32 %v925_v25  ;;  %v1347_v35 = vmul.f32 -1.442695, %v924_v33  ;;  %v1348_v49 = vmul.f32 -1.442695, %v925_v25 }
 0x8c0   :  { %1419 = vpow2.f32 %v1347_v35 }
 0x8c4   :  { %v1418_v26 = vpop.eup %1417 }
 0x8c5   :  { %967 = vrot.lane.b32.xlu0 %v1418_v26, %s1544_s5 }
 0x8c6   :  { %v1420_v36 = vpop.eup %1419 }
 0x8c7   :  { %v932_v43 = vadd.f32 1.0, %v1420_v36 }
 0x8c9   :  { %1421 = vrcp.f32 %v932_v43  ;;  %v945_v47 = vand.u32 2147483648, %v932_v43  ;;  %vm939_vm4 = vweird.f32 %v932_v43  ;;  %v943_v59 = vand.u32 2147483647, %v932_v43 }
 0x8cb   :  { %v946_v6 = vor.u32 1.1754944e-38, %v945_v47  ;;  %vm944_vm6 = vcmp.eq.f32.partialorder %v943_v59, 8.507059e+37 }
 0x8cf   :  { %v1422_v12 = vpop.eup %1421 }
 0x8d0   :  { %v935_v44 = vmul.f32 %v1422_v12, %v932_v43  ;;  %vm940_vm3 = vweird.f32 %v1422_v12 }
 0x8d1   :  { %vm941_vm5 = vmor %vm939_vm4, %vm940_vm3 }
 0x8d2   :  { %v936_v22 = vsub.f32 1.0, %v935_v44 }
 0x8d4   :  { %v937_v46 = vmul.f32 %v1422_v12, %v936_v22 }
 0x8d6   :  { %v938_v34 = vadd.f32 %v1422_v12, %v937_v46 }
 0x8d8   :  { %v942_v8 = vsel %vm941_vm5, %v1422_v12, %v938_v34 }
 0x8d9   :  { %v947_v58 = vsel %vm944_vm6, %v946_v6, %v942_v8 }
 0x8da   :  { %v965_v37 = vmul.f32 %v947_v58, %v874_v0 }
 0x937   :  { %v968_v52 = vpop.permute.xlu0 %967 }
 0x938   :  { %v970_v30 = vmul.f32 %v968_v52, %v947_v58 }
 0x93a   :  { %972 = vrot.lane.b32.xlu1 %v970_v30, %s1544_s5 }
 0x9ac   :  { %v973_v38 = vpop.permute.xlu1 %972 }
 0x9ad   :  { %v975_v39 = vadd.f32 %v973_v38, %v965_v37 }
 0x9af   :  { %1423 = vtanh.f32 %v975_v39 }
 0x9b0   :  { %1425 = vpow2.f32 %v1348_v49 }
 0x9b5   :  { %v1424_v42 = vpop.eup %1423 }
 0x9b6   :  { %978 = vrot.lane.b32.xlu2 %v1424_v42, %s1544_s5  ;;  %v1426_v45 = vpop.eup %1425 }
 0x9b7   :  { %v933_v50 = vadd.f32 1.0, %v1426_v45 }
 0x9b9   :  { %1427 = vrcp.f32 %v933_v50  ;;  %v960_v57 = vand.u32 2147483648, %v933_v50  ;;  %vm954_vm8 = vweird.f32 %v933_v50  ;;  %v958_v60 = vand.u32 2147483647, %v933_v50 }
 0x9bb   :  { %v961_v41 = vor.u32 1.1754944e-38, %v960_v57  ;;  %vm959_vm11 = vcmp.eq.f32.partialorder %v958_v60, 8.507059e+37 }
 0x9bf   :  { %v1428_v48 = vpop.eup %1427 }
 0x9c0   :  { %v950_v51 = vmul.f32 %v1428_v48, %v933_v50  ;;  %vm955_vm7 = vweird.f32 %v1428_v48 }
 0x9c1   :  { %vm956_vm10 = vmor %vm954_vm8, %vm955_vm7 }
 0x9c2   :  { %v951_v54 = vsub.f32 1.0, %v950_v51 }
 0x9c4   :  { %v952_v56 = vmul.f32 %v1428_v48, %v951_v54 }
 0x9c6   :  { %v953_v55 = vadd.f32 %v1428_v48, %v952_v56 }
 0x9c8   :  { %v957_v61 = vsel %vm956_vm10, %v1428_v48, %v953_v55 }
 0x9c9   :  { %v962_v17 = vsel %vm959_vm11, %v961_v41, %v957_v61 }
 0xa10   :  { %v979_v40 = vpop.permute.xlu2 %978 }
 0xa11   :  { %v981_v53 = vmul.f32 %v979_v40, %v962_v17 }
 0xa13   :  { %1349 = vmatmul.msk.f32.vlgmr.msrb.gmra.mxu2 %vm476_vm9, %v981_v53  ;;  %1350 = vmatmul.msk.f32.vlgmr.msrb.gmra.mxu3 %vm476_vm9, %v981_v53 }
 0xa96   :  { %v1022_v62 = vpop.f32.mrf.mxu3  ;;  %v1002_v1 = vpop.f32.mrf.mxu2 }
 0xa97   :  { %v1026_v63 = vadd.f32 %v1022_v62, %v1897_v3  ;;  %v1025_v4 = vadd.f32 %v1002_v1, %v1895_v2 }
 0xa99   :  { %1429 = vtanh.f32 %v1026_v63  ;;  %v1351_v5 = vmul.f32 -1.442695, %v1025_v4  ;;  %v1352_v32 = vmul.f32 -1.442695, %v1026_v63 }
 0xa9b   :  { %1431 = vpow2.f32 %v1351_v5 }
 0xa9f   :  { %v1430_v0 = vpop.eup %1429 }
 0xaa0   :  { %1068 = vrot.lane.b32.xlu0 %v1430_v0, %s1544_s5 }
 0xaa1   :  { %v1432_v7 = vpop.eup %1431 }
 0xaa2   :  { %v1033_v16 = vadd.f32 1.0, %v1432_v7 }
 0xaa4   :  { %1433 = vrcp.f32 %v1033_v16  ;;  %v1046_v20 = vand.u32 2147483648, %v1033_v16  ;;  %vm1040_vm13 = vweird.f32 %v1033_v16  ;;  %v1044_v3 = vand.u32 2147483647, %v1033_v16 }
 0xaa6   :  { %v1047_v28 = vor.u32 1.1754944e-38, %v1046_v20  ;;  %vm1045_vm15 = vcmp.eq.f32.partialorder %v1044_v3, 8.507059e+37 }
 0xaaa   :  { %v1434_v21 = vpop.eup %1433 }
 0xaab   :  { %v1036_v9 = vmul.f32 %v1434_v21, %v1033_v16  ;;  %vm1041_vm12 = vweird.f32 %v1434_v21 }
 0xaac   :  { %vm1042_vm14 = vmor %vm1040_vm13, %vm1041_vm12 }
 0xaad   :  { %v1037_v10 = vsub.f32 1.0, %v1036_v9 }
 0xaaf   :  { %v1038_v29 = vmul.f32 %v1434_v21, %v1037_v10 }
 0xab1   :  { %v1039_v11 = vadd.f32 %v1434_v21, %v1038_v29 }
 0xab3   :  { %v1043_v13 = vsel %vm1042_vm14, %v1434_v21, %v1039_v11 }
 0xab4   :  { %v1048_v2 = vsel %vm1045_vm15, %v1047_v28, %v1043_v13 }
 0xab5   :  { %v1066_v23 = vmul.f32 %v1048_v2, %v975_v39 }
 0xb12   :  { %v1069_v18 = vpop.permute.xlu0 %1068 }
 0xb13   :  { %v1071_v19 = vmul.f32 %v1069_v18, %v1048_v2 }
 0xb15   :  { %1073 = vrot.lane.b32.xlu1 %v1071_v19, %s1544_s5 }
 0xb87   :  { %v1074_v24 = vpop.permute.xlu1 %1073 }
 0xb88   :  { %v1076_v25 = vadd.f32 %v1074_v24, %v1066_v23 }
 0xb8a   :  { %1435 = vtanh.f32 %v1076_v25 }
 0xb8b   :  { %1437 = vpow2.f32 %v1352_v32 }
 0xb90   :  { %v1436_v26 = vpop.eup %1435 }
 0xb91   :  { %1079 = vrot.lane.b32.xlu2 %v1436_v26, %s1544_s5  ;;  %v1438_v33 = vpop.eup %1437 }
 0xb92   :  { %v1034_v35 = vadd.f32 1.0, %v1438_v33 }
 0xb94   :  { %1439 = vrcp.f32 %v1034_v35  ;;  %v1061_v46 = vand.u32 2147483648, %v1034_v35  ;;  %vm1055_vm1 = vweird.f32 %v1034_v35  ;;  %v1059_v34 = vand.u32 2147483647, %v1034_v35 }
 0xb96   :  { %v1062_v59 = vor.u32 1.1754944e-38, %v1061_v46  ;;  %vm1060_vm3 = vcmp.eq.f32.partialorder %v1059_v34, 8.507059e+37 }
 0xb9a   :  { %v1440_v36 = vpop.eup %1439 }
 0xb9b   :  { %v1051_v43 = vmul.f32 %v1440_v36, %v1034_v35  ;;  %vm1056_vm0 = vweird.f32 %v1440_v36 }
 0xb9c   :  { %vm1057_vm2 = vmor %vm1055_vm1, %vm1056_vm0 }
 0xb9d   :  { %v1052_v12 = vsub.f32 1.0, %v1051_v43 }
 0xb9f   :  { %v1053_v44 = vmul.f32 %v1440_v36, %v1052_v12 }
 0xba1   :  { %v1054_v22 = vadd.f32 %v1440_v36, %v1053_v44 }
 0xba3   :  { %v1058_v47 = vsel %vm1057_vm2, %v1440_v36, %v1054_v22 }
 0xba4   :  { %v1063_v8 = vsel %vm1060_vm3, %v1062_v59, %v1058_v47 }
 0xbeb   :  { %v1080_v6 = vpop.permute.xlu2 %1079 }
 0xbec   :  { %v1082_v52 = vmul.f32 %v1080_v6, %v1063_v8 }
 0xbee   :  { %1353 = vmatmul.msk.f32.vlgmr.msrb.gmra.mxu0 %vm476_vm9, %v1082_v52  ;;  %1354 = vmatmul.msk.f32.vlgmr.msrb.gmra.mxu1 %vm476_vm9, %v1082_v52 }
 0xc6b   :  { %v1123_v58 = vpop.f32.mrf.mxu1  ;;  %v1103_v38 = vpop.f32.mrf.mxu0 }
 0xc6c   :  { %v1127_v30 = vadd.f32 %v1123_v58, %v1901_v15  ;;  %v1126_v39 = vadd.f32 %v1103_v38, %v1899_v14 }
 0xc6e   :  { %1441 = vtanh.f32 %v1127_v30  ;;  %v1355_v42 = vmul.f32 -1.442695, %v1126_v39  ;;  %v1356_v63 = vmul.f32 -1.442695, %v1127_v30 }
 0xc70   :  { %1443 = vpow2.f32 %v1355_v42 }
 0xc74   :  { %v1442_v37 = vpop.eup %1441 }
 0xc75   :  { %1169 = vrot.lane.b32.xlu0 %v1442_v37, %s1544_s5 }
 0xc76   :  { %v1444_v49 = vpop.eup %1443 }
 0xc77   :  { %v1134_v45 = vadd.f32 1.0, %v1444_v49 }
 0xc79   :  { %1445 = vrcp.f32 %v1134_v45  ;;  %v1147_v55 = vand.u32 2147483648, %v1134_v45  ;;  %vm1141_vm5 = vweird.f32 %v1134_v45  ;;  %v1145_v15 = vand.u32 2147483647, %v1134_v45 }
 0xc7b   :  { %v1148_v60 = vor.u32 1.1754944e-38, %v1147_v55  ;;  %vm1146_vm7 = vcmp.eq.f32.partialorder %v1145_v15, 8.507059e+37 }
 0xc7f   :  { %v1446_v50 = vpop.eup %1445 }
 0xc80   :  { %v1137_v48 = vmul.f32 %v1446_v50, %v1134_v45  ;;  %vm1142_vm4 = vweird.f32 %v1446_v50 }
 0xc81   :  { %vm1143_vm6 = vmor %vm1141_vm5, %vm1142_vm4 }
 0xc82   :  { %v1138_v51 = vsub.f32 1.0, %v1137_v48 }
 0xc84   :  { %v1139_v54 = vmul.f32 %v1446_v50, %v1138_v51 }
 0xc86   :  { %v1140_v56 = vadd.f32 %v1446_v50, %v1139_v54 }
 0xc88   :  { %v1144_v57 = vsel %vm1143_vm6, %v1446_v50, %v1140_v56 }
 0xc89   :  { %v1149_v14 = vsel %vm1146_vm7, %v1148_v60, %v1144_v57 }
 0xc8a   :  { %v1167_v17 = vmul.f32 %v1149_v14, %v1076_v25 }
 0xce7   :  { %v1170_v61 = vpop.permute.xlu0 %1169 }
 0xce8   :  { %v1172_v41 = vmul.f32 %v1170_v61, %v1149_v14 }
 0xcea   :  { %1174 = vrot.lane.b32.xlu1 %v1172_v41, %s1544_s5 }
 0xd5c   :  { %v1175_v40 = vpop.permute.xlu1 %1174 }
 0xd5d   :  { %v1177_v53 = vadd.f32 %v1175_v40, %v1167_v17 }
 0xd5f   :  { %1447 = vtanh.f32 %v1177_v53 }
 0xd60   :  { %1449 = vpow2.f32 %v1356_v63 }
 0xd65   :  { %v1448_v62 = vpop.eup %1447 }
 0xd66   :  { %1180 = vrot.lane.b32.xlu2 %v1448_v62, %s1544_s5  ;;  %v1450_v0 = vpop.eup %1449 }
 0xd67   :  { %v1135_v1 = vadd.f32 1.0, %v1450_v0 }
 0xd69   :  { %1451 = vrcp.f32 %v1135_v1  ;;  %v1162_v9 = vand.u32 2147483648, %v1135_v1  ;;  %vm1156_vm10 = vweird.f32 %v1135_v1  ;;  %v1160_v10 = vand.u32 2147483647, %v1135_v1 }
 0xd6b   :  { %v1163_v11 = vor.u32 1.1754944e-38, %v1162_v9  ;;  %vm1161_vm12 = vcmp.eq.f32.partialorder %v1160_v10, 8.507059e+37 }
 0xd6f   :  { %v1452_v4 = vpop.eup %1451 }
 0xd70   :  { %v1152_v5 = vmul.f32 %v1452_v4, %v1135_v1  ;;  %vm1157_vm8 = vweird.f32 %v1452_v4 }
 0xd71   :  { %vm1158_vm11 = vmor %vm1156_vm10, %vm1157_vm8 }
 0xd72   :  { %v1153_v7 = vsub.f32 1.0, %v1152_v5 }
 0xd74   :  { %v1154_v16 = vmul.f32 %v1452_v4, %v1153_v7 }
 0xd76   :  { %v1155_v21 = vadd.f32 %v1452_v4, %v1154_v16 }
 0xd78   :  { %v1159_v29 = vsel %vm1158_vm11, %v1452_v4, %v1155_v21 }
 0xd79   :  { %v1164_v20 = vsel %vm1161_vm12, %v1163_v11, %v1159_v29 }
 0xdc0   :  { %v1181_v3 = vpop.permute.xlu2 %1180 }
 0xdc1   :  { %v1183_v13 = vmul.f32 %v1181_v3, %v1164_v20 }
 0xdc3   :  { %1357 = vmatmul.msk.f32.vlgmr.msra.gmra.mxu2 %vm476_vm9, %v1183_v13  ;;  %1358 = vmatmul.msk.f32.vlgmr.msra.gmra.mxu3 %vm476_vm9, %v1183_v13 }
 0xe46   :  { %v1224_v28 = vpop.f32.mrf.mxu3  ;;  %v1204_v19 = vpop.f32.mrf.mxu2 }
 0xe47   :  { %v1228_v18 = vadd.f32 %v1224_v28, %v1905_v31  ;;  %v1227_v23 = vadd.f32 %v1204_v19, %v1903_v27 }
 0xe49   :  { %1453 = vtanh.f32 %v1228_v18  ;;  %v1359_v24 = vmul.f32 -1.442695, %v1227_v23 }
 0xe4b   :  { %1455 = vpow2.f32 %v1359_v24 }
 0xe4f   :  { %v1454_v2 = vpop.eup %1453 }
 0xe50   :  { %1251 = vrot.lane.b32.xlu0 %v1454_v2, %s1544_s5 }
 0xe51   :  { %v1456_v25 = vpop.eup %1455 }
 0xe52   :  { %v1232_v26 = vadd.f32 1.0, %v1456_v25 }
 0xe54   :  { %1457 = vrcp.f32 %v1232_v26  ;;  %v1244_v12 = vand.u32 2147483648, %v1232_v26  ;;  %vm1238_vm14 = vweird.f32 %v1232_v26  ;;  %v1242_v31 = vand.u32 2147483647, %v1232_v26 }
 0xe56   :  { %v1245_v22 = vor.u32 1.1754944e-38, %v1244_v12  ;;  %vm1243_vm0 = vcmp.eq.f32.partialorder %v1242_v31, 8.507059e+37 }
 0xe5a   :  { %v1458_v32 = vpop.eup %1457 }
 0xe5b   :  { %v1234_v33 = vmul.f32 %v1458_v32, %v1232_v26  ;;  %vm1239_vm13 = vweird.f32 %v1458_v32 }
 0xe5c   :  { %vm1240_vm15 = vmor %vm1238_vm14, %vm1239_vm13 }
 0xe5d   :  { %v1235_v35 = vsub.f32 1.0, %v1234_v33 }
 0xe5f   :  { %v1236_v36 = vmul.f32 %v1458_v32, %v1235_v35 }
 0xe61   :  { %v1237_v43 = vadd.f32 %v1458_v32, %v1236_v36 }
 0xe63   :  { %v1241_v44 = vsel %vm1240_vm15, %v1458_v32, %v1237_v43 }
 0xe64   :  { %v1246_v27 = vsel %vm1243_vm0, %v1245_v22, %v1241_v44 }
 0xe65   :  { %v1249_v47 = vmul.f32 %v1246_v27, %v1177_v53 }
 0xec2   :  { %v1252_v46 = vpop.permute.xlu0 %1251 }
 0xec3   :  { %v1254_v34 = vmul.f32 %v1252_v46, %v1246_v27 }
 0xec5   :  { %1256 = vrot.lane.b32.xlu1 %v1254_v34, %s1544_s5 }
 0xf37   :  { %v1257_v59 = vpop.permute.xlu1 %1256 }
 0xf38   :  { %v1259_v8 = vadd.f32 %v1257_v59, %v1249_v47 }
 0xf3a   :  { %1261 = vrot.lane.b32.xlu2 %v1259_v8, %s1544_s5 }
 0xf94   :  { %v1262_v6 = vpop.permute.xlu2 %1261 }
 0xf95   :  { %1264 = vst.msk [vmem:[#allocation7] sm:$0xff] %vm476_vm9, %v1262_v6 }
 0xf96   :  { %1275 = dma.vmem_to_hbm [thread:$0]  %s1271_s3, 128, %s1273_s17, [#allocation4]  }
 0xf97   :  { %1535 = dma.done.wait [#allocation4], 128  }
 0xf98   :  { %1536 = vsyncadd [#allocation4], 4294967168 }
 0xf99   :  { %1280 = vsyncpa [#allocation3], 1 }
 0xf9a   :  { %1281 = vsyncpa [#allocation6], 1 }
 0xf9b   :  { %1282 = vsyncpa [#allocation4], 1 }

</bundles_post_ra>
